<compile_context>
chip_gen: v7x
topology: tpu7x:2x2x1
jax: 0.10.0
libtpu: 0.0.40
codegen_flags: <defaults>
</compile_context>

<pallas_src>
import math
import functools

import numpy as np
import jax
import jax.numpy as jnp
from jax import lax
from jax.experimental import pallas as pl
from jax.experimental.pallas import tpu as pltpu


def bert_embedding_kernel(seed_ref, seq_ref,                          # scalar prefetch (SMEM)
                          tok_hbm, seg_tab_ref, seg_ids_ref, pe_ref,  # inputs
                          out_ref,                                    # output (tm, Ep) block
                          tok_stage, sem,                             # scratch
                          *, dropout_p, tm, seq_len, embed_pad):
    i = pl.program_id(0)
    n = pl.num_programs(0)
    slot = lax.rem(i, 2)

    # ---- issue all token-row gathers of a tile into one staging slot / one DMA sem ----
    def issue_tile(tile_idx, dst_slot):
        base = tile_idx * tm

        def issue_row(r, carry):
            tok_id = seq_ref[base + r]
            pltpu.make_async_copy(tok_hbm.at[tok_id],
                                  tok_stage.at[dst_slot, r],
                                  sem.at[dst_slot]).start()
            return carry

        lax.fori_loop(0, tm, issue_row, 0, unroll=8)

    # Prime the pipeline with tile 0 on the first grid step.
    @pl.when(i == 0)
    def _():
        issue_tile(0, 0)

    # Prefetch the next tile's rows into the other slot while this tile computes.
    # (Requires the grid axis to be sequential -> dimension_semantics=("arbitrary",).)
    @pl.when(i + 1 < n)
    def _():
        issue_tile(i + 1, 1 - slot)

    # Single aggregated wait: the tm row copies of this slot each signal sem[slot] with one
    # row's bytes; a dummy (tm, Ep)-sized descriptor makes the wait cover the whole tile.
    pltpu.make_async_copy(tok_hbm.at[pl.ds(0, tm)], tok_stage.at[slot], sem.at[slot]).wait()

    # ---- segment embedding: 3-way VPU select against the VMEM-resident (3, Ep) table ----
    seg_ids = seg_ids_ref[...]                                   # (tm, 1) int32
    seg_all = seg_tab_ref[...]                                   # (3, Ep)
    seg0 = seg_all[0:1, :]
    seg1 = seg_all[1:2, :]
    seg2 = seg_all[2:3, :]
    seg_emb = jnp.where(seg_ids == 1, seg1, jnp.where(seg_ids == 2, seg2, seg0))

    # ---- positional tile: slice from the VMEM-resident (S, Ep) table (tm divides S) ----
    pos_start = (i % (seq_len // tm)) * tm
    pe_tile = pe_ref[pl.ds(pos_start, tm), :]

    # ---- fused add: token + positional + segment (one (tm, Ep) pass on the VPU) ----
    x = tok_stage[slot] + pe_tile + seg_emb

    # ---- dropout: stateless per-element hash -> uniform -> keep/scale ----
    # TODO(synk): torch.nn.Dropout's exact RNG stream cannot be reproduced; Bernoulli(p)
    # drop + 1/(1-p) rescale is implemented with a counter-based hash (deterministic in
    # (seed, element index)) so it lowers on both TPU and the interpret fallback.
    if dropout_p > 0.0:
        base = i * tm
        rows = lax.broadcasted_iota(jnp.int32, x.shape, 0) + base
        cols = lax.broadcasted_iota(jnp.int32, x.shape, 1)
        h = ((rows * embed_pad + cols) ^ seed_ref[0]).astype(jnp.uint32)
        h = h ^ (h >> 16)
        h = h * jnp.uint32(0x7FEB352D)
        h = h ^ (h >> 15)
        h = h * jnp.uint32(0x846CA68B)
        h = h ^ (h >> 16)
        u = (h >> 8).astype(jnp.int32).astype(jnp.float32) * jnp.float32(1.0 / (1 << 24))
        keep = u >= jnp.float32(dropout_p)
        scale = jnp.float32(1.0 / (1.0 - dropout_p))
        x = jnp.where(keep, x * scale, jnp.float32(0.0))

    out_ref[...] = x.astype(out_ref.dtype)


def _row_tile(seq_len, total_rows):
    # Row tile must divide seq_len (so a tile never crosses a batch row and the positional
    # window is a contiguous slice) and be sublane-friendly (multiple of 8).
    cands = [c for c in (1024, 512, 256, 128, 64, 32, 16, 8) if seq_len % c == 0]
    if not cands:
        raise ValueError("seq_len must be a multiple of 8 for this kernel")
    tm = cands[0]
    # Prefer >= 2 grid steps so the cross-tile gather prefetch has something to overlap.
    for c in cands:
        if total_rows // c >= 2:
            tm = c
            break
    return tm


def bert_embedding(seq, seg, tok_tab, seg_tab, pe, *, dropout_p=0.1, seed=0):
    """seq, seg: [B, S] int32; tok_tab: [V, E]; seg_tab: [3, E]; pe: [S, E] -> [B, S, E] f32."""
    assert 0.0 <= dropout_p < 1.0, "dropout_p must be in [0, 1)"
    B, S = seq.shape
    V, E = tok_tab.shape
    BS = B * S

    # Lane-align the embedding width so the (tm, Ep) output stores are unmasked 128-lane vst.
    E_p = ((E + 127) // 128) * 128
    if E_p != E:
        pad = ((0, 0), (0, E_p - E))
        tok_tab = jnp.pad(tok_tab, pad)
        seg_tab = jnp.pad(seg_tab, pad)
        pe = jnp.pad(pe, pad)
    tok_tab = tok_tab.astype(jnp.float32)
    seg_tab = seg_tab.astype(jnp.float32)
    pe = pe.astype(jnp.float32)

    tm = _row_tile(S, BS)
    num_tiles = BS // tm
    assert V >= tm, "vocab must have at least tm rows (aggregated-wait descriptor sizing)"

    seq_flat = seq.reshape(BS).astype(jnp.int32)          # token ids -> SMEM (scalar prefetch)
    seg_ids2d = seg.reshape(BS, 1).astype(jnp.int32)      # segment ids -> VMEM (tm, 1) blocks
    seed_arr = jnp.array([seed], dtype=jnp.int32)

    kernel = functools.partial(bert_embedding_kernel, dropout_p=float(dropout_p),
                               tm=tm, seq_len=S, embed_pad=E_p)

    grid_spec = pltpu.PrefetchScalarGridSpec(
        num_scalar_prefetch=2,                             # seed, token ids -> SMEM
        grid=(num_tiles,),
        in_specs=[
            pl.BlockSpec(memory_space=pl.ANY),                        # token table stays in HBM
            pl.BlockSpec((3, E_p), lambda i, sd, sq: (0, 0)),         # segment table, VMEM resident
            pl.BlockSpec((tm, 1), lambda i, sd, sq: (i, 0)),          # per-tile segment ids
            pl.BlockSpec((S, E_p), lambda i, sd, sq: (0, 0)),         # positional table, VMEM resident
        ],
        out_specs=pl.BlockSpec((tm, E_p), lambda i, sd, sq: (i, 0)),  # lane-dense output tile
        scratch_shapes=[
            pltpu.VMEM((2, tm, E_p), jnp.float32),         # double-buffered token-row staging
            pltpu.SemaphoreType.DMA((2,)),                 # one DMA semaphore per staging slot
        ],
    )

    # VMEM footprint: resident pe + seg table, 2x gather staging, double-buffered out blocks.
    vmem_est = 4 * E_p * (S + 3 + 4 * tm) + 8 * tm + (1 << 20)
    vmem_limit = None
    if vmem_est > 12 * 1024 * 1024:                        # v5e scoped default is only 16 MiB
        vmem_limit = int(min(vmem_est * 2, 64 * 1024 * 1024))

    out_flat = pl.pallas_call(
        kernel,
        out_shape=jax.ShapeDtypeStruct((BS, E_p), jnp.float32),
        grid_spec=grid_spec,
        compiler_params=pltpu.CompilerParams(
            # Cross-tile gather prefetch keys the staging slot off program_id, so the
            # row-tile axis must run sequentially.
            dimension_semantics=("arbitrary",),
            vmem_limit_bytes=vmem_limit,
        ),
    )(seed_arr, seq_flat, tok_tab, seg_tab, seg_ids2d, pe)

    return out_flat[:, :E].reshape(B, S, E)                # column slice + metadata reshape


if __name__ == "__main__":
    B, S, V, E = 2, 8, 32, 32       # batch, seq_len (== PositionalEmbedding max_len), vocab, embed
    DROPOUT_P = 0.1

    key = jax.random.PRNGKey(0)
    k_tok, k_seg, k_ids, k_lbl = jax.random.split(key, 4)

    # nn.Embedding default init ~ N(0, 1); padding_idx=0 => row 0 zeroed.
    tok_tab = jax.random.normal(k_tok, (V, E), jnp.float32).at[0].set(0.0)
    seg_tab = jax.random.normal(k_seg, (3, E), jnp.float32).at[0].set(0.0)

    # PositionalEmbedding table, exactly matching the PyTorch loop.
    pe_np = np.zeros((S, E), np.float32)
    for pos in range(S):
        for i in range(0, E, 2):
            pe_np[pos, i] = math.sin(pos / 10000 ** (2 * i / E))
            pe_np[pos, i + 1] = math.cos(pos / 10000 ** (2 * (i + 1) / E))
    pe = jnp.asarray(pe_np)

    sequence = jax.random.randint(k_ids, (B, S), 0, V, jnp.int32)
    segment_label = jax.random.randint(k_lbl, (B, S), 0, 3, jnp.int32)

    # Deterministic path (dropout disabled): must match the pure-JAX gather reference.
    out_nodrop = bert_embedding(sequence, segment_label, tok_tab, seg_tab, pe, dropout_p=0.0)
    jax.block_until_ready(out_nodrop)
    ref = tok_tab[sequence] + pe[None, :, :] + seg_tab[segment_label]
    np.testing.assert_allclose(np.asarray(out_nodrop), np.asarray(ref), rtol=1e-6, atol=1e-6)

    # Training-mode forward (dropout p=0.1): every kept element must equal ref / (1 - p).
    out = bert_embedding(sequence, segment_label, tok_tab, seg_tab, pe,
                         dropout_p=DROPOUT_P, seed=0)
    jax.block_until_ready(out)
    assert out.shape == (B, S, E) and out.dtype == jnp.float32
    out_np, ref_np = np.asarray(out), np.asarray(ref)
    kept = out_np != 0.0
    np.testing.assert_allclose(out_np[kept], (ref_np / (1.0 - DROPOUT_P))[kept],
                               rtol=1e-5, atol=1e-5)

    print("KERNEL_OK")
</pallas_src>

<mosaic_0001>
module attributes {stable_mosaic.version = 11 : i64} {
  func.func @bert_embedding_kernel(%arg0: i32, %arg1: memref<1xi32, #tpu.memory_space<smem>>, %arg2: memref<16xi32, #tpu.memory_space<smem>>, %arg3: memref<32x128xf32, #tpu.memory_space<any>>, %arg4: memref<3x128xf32, #tpu.memory_space<vmem>>, %arg5: memref<8x1xi32, #tpu.memory_space<vmem>>, %arg6: memref<8x128xf32, #tpu.memory_space<vmem>>, %arg7: memref<8x128xf32, #tpu.memory_space<vmem>>, %arg8: memref<2x8x128xf32, #tpu.memory_space<vmem>>, %arg9: memref<2x!tpu.dma_semaphore, #tpu.memory_space<semaphore_mem>>) attributes {dimension_semantics = [#tpu.dimension_semantics<arbitrary>], iteration_bounds = array<i64: 2>, scalar_prefetch = 2 : i64, scratch_operands = 2 : i64, tpu.core_type = #tpu.core_type<tc>, window_params = [{}, {pipeline_mode = #tpu.pipeline_mode<synchronous>, transform_indices = @transform_1, window_bounds = array<i64: 3, 128>}, {transform_indices = @transform_2, window_bounds = array<i64: 8, 1>}, {pipeline_mode = #tpu.pipeline_mode<synchronous>, transform_indices = @transform_3, window_bounds = array<i64: 8, 128>}, {transform_indices = @transform_4, window_bounds = array<i64: 8, 128>}]} {
    %c2_i32 = arith.constant 2 : i32
    %0 = arith.remsi %arg0, %c2_i32 : i32
    %c0_i32 = arith.constant 0 : i32
    %1 = arith.cmpi eq, %arg0, %c0_i32 : i32
    %2 = arith.extui %1 : i1 to i32
    %c0_i32_0 = arith.constant 0 : i32
    %3 = arith.cmpi ne, %2, %c0_i32_0 : i32
    scf.if %3 {
      %c0_i32_23 = arith.constant 0 : i32
      %c0_i32_24 = arith.constant 0 : i32
      %53 = arith.addi %c0_i32_24, %c0_i32_23 : i32
      %54 = arith.index_cast %53 : i32 to index
      %55 = memref.load %arg2[%54] : memref<16xi32, #tpu.memory_space<smem>>
      %c0_i32_25 = arith.constant 0 : i32
      %c0_i32_26 = arith.constant 0 : i32
      %c0_i32_27 = arith.constant 0 : i32
      %56 = tpu.memref_slice %arg3[%55, %c0_i32_27] : memref<32x128xf32, #tpu.memory_space<any>> -> memref<1x128xf32, #tpu.memory_space<any>>
      %57 = tpu.memref_squeeze %56 : memref<1x128xf32, #tpu.memory_space<any>> -> memref<128xf32, #tpu.memory_space<any>>
      %c0_i32_28 = arith.constant 0 : i32
      %58 = tpu.memref_slice %arg8[%c0_i32_25, %c0_i32_23, %c0_i32_28] : memref<2x8x128xf32, #tpu.memory_space<vmem>> -> memref<1x1x128xf32, #tpu.memory_space<vmem>>
      %59 = tpu.memref_squeeze %58 : memref<1x1x128xf32, #tpu.memory_space<vmem>> -> memref<128xf32, #tpu.memory_space<vmem>>
      %60 = tpu.memref_slice %arg9[%c0_i32_26] : memref<2x!tpu.dma_semaphore, #tpu.memory_space<semaphore_mem>> -> memref<1x!tpu.dma_semaphore, #tpu.memory_space<semaphore_mem>>
      %61 = tpu.memref_squeeze %60 : memref<1x!tpu.dma_semaphore, #tpu.memory_space<semaphore_mem>> -> memref<!tpu.dma_semaphore, #tpu.memory_space<semaphore_mem>>
      tpu.enqueue_dma source(%57 : memref<128xf32, #tpu.memory_space<any>>) target(%59 : memref<128xf32, #tpu.memory_space<vmem>>) target_semaphore(%61 : memref<!tpu.dma_semaphore, #tpu.memory_space<semaphore_mem>>)
      %c1_i32_29 = arith.constant 1 : i32
      %c0_i32_30 = arith.constant 0 : i32
      %62 = arith.addi %c0_i32_30, %c1_i32_29 : i32
      %63 = arith.index_cast %62 : i32 to index
      %64 = memref.load %arg2[%63] : memref<16xi32, #tpu.memory_space<smem>>
      %c0_i32_31 = arith.constant 0 : i32
      %c0_i32_32 = arith.constant 0 : i32
      %c0_i32_33 = arith.constant 0 : i32
      %65 = tpu.memref_slice %arg3[%64, %c0_i32_33] : memref<32x128xf32, #tpu.memory_space<any>> -> memref<1x128xf32, #tpu.memory_space<any>>
      %66 = tpu.memref_squeeze %65 : memref<1x128xf32, #tpu.memory_space<any>> -> memref<128xf32, #tpu.memory_space<any>>
      %c0_i32_34 = arith.constant 0 : i32
      %67 = tpu.memref_slice %arg8[%c0_i32_31, %c1_i32_29, %c0_i32_34] : memref<2x8x128xf32, #tpu.memory_space<vmem>> -> memref<1x1x128xf32, #tpu.memory_space<vmem>>
      %68 = tpu.memref_squeeze %67 : memref<1x1x128xf32, #tpu.memory_space<vmem>> -> memref<128xf32, #tpu.memory_space<vmem>>
      %69 = tpu.memref_slice %arg9[%c0_i32_32] : memref<2x!tpu.dma_semaphore, #tpu.memory_space<semaphore_mem>> -> memref<1x!tpu.dma_semaphore, #tpu.memory_space<semaphore_mem>>
      %70 = tpu.memref_squeeze %69 : memref<1x!tpu.dma_semaphore, #tpu.memory_space<semaphore_mem>> -> memref<!tpu.dma_semaphore, #tpu.memory_space<semaphore_mem>>
      tpu.enqueue_dma source(%66 : memref<128xf32, #tpu.memory_space<any>>) target(%68 : memref<128xf32, #tpu.memory_space<vmem>>) target_semaphore(%70 : memref<!tpu.dma_semaphore, #tpu.memory_space<semaphore_mem>>)
      %c2_i32_35 = arith.constant 2 : i32
      %c0_i32_36 = arith.constant 0 : i32
      %71 = arith.addi %c0_i32_36, %c2_i32_35 : i32
      %72 = arith.index_cast %71 : i32 to index
      %73 = memref.load %arg2[%72] : memref<16xi32, #tpu.memory_space<smem>>
      %c0_i32_37 = arith.constant 0 : i32
      %c0_i32_38 = arith.constant 0 : i32
      %c0_i32_39 = arith.constant 0 : i32
      %74 = tpu.memref_slice %arg3[%73, %c0_i32_39] : memref<32x128xf32, #tpu.memory_space<any>> -> memref<1x128xf32, #tpu.memory_space<any>>
      %75 = tpu.memref_squeeze %74 : memref<1x128xf32, #tpu.memory_space<any>> -> memref<128xf32, #tpu.memory_space<any>>
      %c0_i32_40 = arith.constant 0 : i32
      %76 = tpu.memref_slice %arg8[%c0_i32_37, %c2_i32_35, %c0_i32_40] : memref<2x8x128xf32, #tpu.memory_space<vmem>> -> memref<1x1x128xf32, #tpu.memory_space<vmem>>
      %77 = tpu.memref_squeeze %76 : memref<1x1x128xf32, #tpu.memory_space<vmem>> -> memref<128xf32, #tpu.memory_space<vmem>>
      %78 = tpu.memref_slice %arg9[%c0_i32_38] : memref<2x!tpu.dma_semaphore, #tpu.memory_space<semaphore_mem>> -> memref<1x!tpu.dma_semaphore, #tpu.memory_space<semaphore_mem>>
      %79 = tpu.memref_squeeze %78 : memref<1x!tpu.dma_semaphore, #tpu.memory_space<semaphore_mem>> -> memref<!tpu.dma_semaphore, #tpu.memory_space<semaphore_mem>>
      tpu.enqueue_dma source(%75 : memref<128xf32, #tpu.memory_space<any>>) target(%77 : memref<128xf32, #tpu.memory_space<vmem>>) target_semaphore(%79 : memref<!tpu.dma_semaphore, #tpu.memory_space<semaphore_mem>>)
      %c3_i32 = arith.constant 3 : i32
      %c0_i32_41 = arith.constant 0 : i32
      %80 = arith.addi %c0_i32_41, %c3_i32 : i32
      %81 = arith.index_cast %80 : i32 to index
      %82 = memref.load %arg2[%81] : memref<16xi32, #tpu.memory_space<smem>>
      %c0_i32_42 = arith.constant 0 : i32
      %c0_i32_43 = arith.constant 0 : i32
      %c0_i32_44 = arith.constant 0 : i32
      %83 = tpu.memref_slice %arg3[%82, %c0_i32_44] : memref<32x128xf32, #tpu.memory_space<any>> -> memref<1x128xf32, #tpu.memory_space<any>>
      %84 = tpu.memref_squeeze %83 : memref<1x128xf32, #tpu.memory_space<any>> -> memref<128xf32, #tpu.memory_space<any>>
      %c0_i32_45 = arith.constant 0 : i32
      %85 = tpu.memref_slice %arg8[%c0_i32_42, %c3_i32, %c0_i32_45] : memref<2x8x128xf32, #tpu.memory_space<vmem>> -> memref<1x1x128xf32, #tpu.memory_space<vmem>>
      %86 = tpu.memref_squeeze %85 : memref<1x1x128xf32, #tpu.memory_space<vmem>> -> memref<128xf32, #tpu.memory_space<vmem>>
      %87 = tpu.memref_slice %arg9[%c0_i32_43] : memref<2x!tpu.dma_semaphore, #tpu.memory_space<semaphore_mem>> -> memref<1x!tpu.dma_semaphore, #tpu.memory_space<semaphore_mem>>
      %88 = tpu.memref_squeeze %87 : memref<1x!tpu.dma_semaphore, #tpu.memory_space<semaphore_mem>> -> memref<!tpu.dma_semaphore, #tpu.memory_space<semaphore_mem>>
      tpu.enqueue_dma source(%84 : memref<128xf32, #tpu.memory_space<any>>) target(%86 : memref<128xf32, #tpu.memory_space<vmem>>) target_semaphore(%88 : memref<!tpu.dma_semaphore, #tpu.memory_space<semaphore_mem>>)
      %c4_i32 = arith.constant 4 : i32
      %c0_i32_46 = arith.constant 0 : i32
      %89 = arith.addi %c0_i32_46, %c4_i32 : i32
      %90 = arith.index_cast %89 : i32 to index
      %91 = memref.load %arg2[%90] : memref<16xi32, #tpu.memory_space<smem>>
      %c0_i32_47 = arith.constant 0 : i32
      %c0_i32_48 = arith.constant 0 : i32
      %c0_i32_49 = arith.constant 0 : i32
      %92 = tpu.memref_slice %arg3[%91, %c0_i32_49] : memref<32x128xf32, #tpu.memory_space<any>> -> memref<1x128xf32, #tpu.memory_space<any>>
      %93 = tpu.memref_squeeze %92 : memref<1x128xf32, #tpu.memory_space<any>> -> memref<128xf32, #tpu.memory_space<any>>
      %c0_i32_50 = arith.constant 0 : i32
      %94 = tpu.memref_slice %arg8[%c0_i32_47, %c4_i32, %c0_i32_50] : memref<2x8x128xf32, #tpu.memory_space<vmem>> -> memref<1x1x128xf32, #tpu.memory_space<vmem>>
      %95 = tpu.memref_squeeze %94 : memref<1x1x128xf32, #tpu.memory_space<vmem>> -> memref<128xf32, #tpu.memory_space<vmem>>
      %96 = tpu.memref_slice %arg9[%c0_i32_48] : memref<2x!tpu.dma_semaphore, #tpu.memory_space<semaphore_mem>> -> memref<1x!tpu.dma_semaphore, #tpu.memory_space<semaphore_mem>>
      %97 = tpu.memref_squeeze %96 : memref<1x!tpu.dma_semaphore, #tpu.memory_space<semaphore_mem>> -> memref<!tpu.dma_semaphore, #tpu.memory_space<semaphore_mem>>
      tpu.enqueue_dma source(%93 : memref<128xf32, #tpu.memory_space<any>>) target(%95 : memref<128xf32, #tpu.memory_space<vmem>>) target_semaphore(%97 : memref<!tpu.dma_semaphore, #tpu.memory_space<semaphore_mem>>)
      %c5_i32 = arith.constant 5 : i32
      %c0_i32_51 = arith.constant 0 : i32
      %98 = arith.addi %c0_i32_51, %c5_i32 : i32
      %99 = arith.index_cast %98 : i32 to index
      %100 = memref.load %arg2[%99] : memref<16xi32, #tpu.memory_space<smem>>
      %c0_i32_52 = arith.constant 0 : i32
      %c0_i32_53 = arith.constant 0 : i32
      %c0_i32_54 = arith.constant 0 : i32
      %101 = tpu.memref_slice %arg3[%100, %c0_i32_54] : memref<32x128xf32, #tpu.memory_space<any>> -> memref<1x128xf32, #tpu.memory_space<any>>
      %102 = tpu.memref_squeeze %101 : memref<1x128xf32, #tpu.memory_space<any>> -> memref<128xf32, #tpu.memory_space<any>>
      %c0_i32_55 = arith.constant 0 : i32
      %103 = tpu.memref_slice %arg8[%c0_i32_52, %c5_i32, %c0_i32_55] : memref<2x8x128xf32, #tpu.memory_space<vmem>> -> memref<1x1x128xf32, #tpu.memory_space<vmem>>
      %104 = tpu.memref_squeeze %103 : memref<1x1x128xf32, #tpu.memory_space<vmem>> -> memref<128xf32, #tpu.memory_space<vmem>>
      %105 = tpu.memref_slice %arg9[%c0_i32_53] : memref<2x!tpu.dma_semaphore, #tpu.memory_space<semaphore_mem>> -> memref<1x!tpu.dma_semaphore, #tpu.memory_space<semaphore_mem>>
      %106 = tpu.memref_squeeze %105 : memref<1x!tpu.dma_semaphore, #tpu.memory_space<semaphore_mem>> -> memref<!tpu.dma_semaphore, #tpu.memory_space<semaphore_mem>>
      tpu.enqueue_dma source(%102 : memref<128xf32, #tpu.memory_space<any>>) target(%104 : memref<128xf32, #tpu.memory_space<vmem>>) target_semaphore(%106 : memref<!tpu.dma_semaphore, #tpu.memory_space<semaphore_mem>>)
      %c6_i32 = arith.constant 6 : i32
      %c0_i32_56 = arith.constant 0 : i32
      %107 = arith.addi %c0_i32_56, %c6_i32 : i32
      %108 = arith.index_cast %107 : i32 to index
      %109 = memref.load %arg2[%108] : memref<16xi32, #tpu.memory_space<smem>>
      %c0_i32_57 = arith.constant 0 : i32
      %c0_i32_58 = arith.constant 0 : i32
      %c0_i32_59 = arith.constant 0 : i32
      %110 = tpu.memref_slice %arg3[%109, %c0_i32_59] : memref<32x128xf32, #tpu.memory_space<any>> -> memref<1x128xf32, #tpu.memory_space<any>>
      %111 = tpu.memref_squeeze %110 : memref<1x128xf32, #tpu.memory_space<any>> -> memref<128xf32, #tpu.memory_space<any>>
      %c0_i32_60 = arith.constant 0 : i32
      %112 = tpu.memref_slice %arg8[%c0_i32_57, %c6_i32, %c0_i32_60] : memref<2x8x128xf32, #tpu.memory_space<vmem>> -> memref<1x1x128xf32, #tpu.memory_space<vmem>>
      %113 = tpu.memref_squeeze %112 : memref<1x1x128xf32, #tpu.memory_space<vmem>> -> memref<128xf32, #tpu.memory_space<vmem>>
      %114 = tpu.memref_slice %arg9[%c0_i32_58] : memref<2x!tpu.dma_semaphore, #tpu.memory_space<semaphore_mem>> -> memref<1x!tpu.dma_semaphore, #tpu.memory_space<semaphore_mem>>
      %115 = tpu.memref_squeeze %114 : memref<1x!tpu.dma_semaphore, #tpu.memory_space<semaphore_mem>> -> memref<!tpu.dma_semaphore, #tpu.memory_space<semaphore_mem>>
      tpu.enqueue_dma source(%111 : memref<128xf32, #tpu.memory_space<any>>) target(%113 : memref<128xf32, #tpu.memory_space<vmem>>) target_semaphore(%115 : memref<!tpu.dma_semaphore, #tpu.memory_space<semaphore_mem>>)
      %c7_i32 = arith.constant 7 : i32
      %c0_i32_61 = arith.constant 0 : i32
      %116 = arith.addi %c0_i32_61, %c7_i32 : i32
      %117 = arith.index_cast %116 : i32 to index
      %118 = memref.load %arg2[%117] : memref<16xi32, #tpu.memory_space<smem>>
      %c0_i32_62 = arith.constant 0 : i32
      %c0_i32_63 = arith.constant 0 : i32
      %c0_i32_64 = arith.constant 0 : i32
      %119 = tpu.memref_slice %arg3[%118, %c0_i32_64] : memref<32x128xf32, #tpu.memory_space<any>> -> memref<1x128xf32, #tpu.memory_space<any>>
      %120 = tpu.memref_squeeze %119 : memref<1x128xf32, #tpu.memory_space<any>> -> memref<128xf32, #tpu.memory_space<any>>
      %c0_i32_65 = arith.constant 0 : i32
      %121 = tpu.memref_slice %arg8[%c0_i32_62, %c7_i32, %c0_i32_65] : memref<2x8x128xf32, #tpu.memory_space<vmem>> -> memref<1x1x128xf32, #tpu.memory_space<vmem>>
      %122 = tpu.memref_squeeze %121 : memref<1x1x128xf32, #tpu.memory_space<vmem>> -> memref<128xf32, #tpu.memory_space<vmem>>
      %123 = tpu.memref_slice %arg9[%c0_i32_63] : memref<2x!tpu.dma_semaphore, #tpu.memory_space<semaphore_mem>> -> memref<1x!tpu.dma_semaphore, #tpu.memory_space<semaphore_mem>>
      %124 = tpu.memref_squeeze %123 : memref<1x!tpu.dma_semaphore, #tpu.memory_space<semaphore_mem>> -> memref<!tpu.dma_semaphore, #tpu.memory_space<semaphore_mem>>
      tpu.enqueue_dma source(%120 : memref<128xf32, #tpu.memory_space<any>>) target(%122 : memref<128xf32, #tpu.memory_space<vmem>>) target_semaphore(%124 : memref<!tpu.dma_semaphore, #tpu.memory_space<semaphore_mem>>)
      %c8_i32_66 = arith.constant 8 : i32
    } else {
    }
    %c1_i32 = arith.constant 1 : i32
    %4 = arith.addi %arg0, %c1_i32 : i32
    %c2_i32_1 = arith.constant 2 : i32
    %5 = arith.cmpi slt, %4, %c2_i32_1 : i32
    %6 = arith.extui %5 : i1 to i32
    %c0_i32_2 = arith.constant 0 : i32
    %7 = arith.cmpi ne, %6, %c0_i32_2 : i32
    scf.if %7 {
      %c1_i32_23 = arith.constant 1 : i32
      %53 = arith.addi %arg0, %c1_i32_23 : i32
      %c1_i32_24 = arith.constant 1 : i32
      %54 = arith.subi %c1_i32_24, %0 : i32
      %c8_i32_25 = arith.constant 8 : i32
      %55 = arith.muli %53, %c8_i32_25 : i32
      %c0_i32_26 = arith.constant 0 : i32
      %56 = arith.addi %55, %c0_i32_26 : i32
      %57 = arith.index_cast %56 : i32 to index
      %58 = memref.load %arg2[%57] : memref<16xi32, #tpu.memory_space<smem>>
      %c0_i32_27 = arith.constant 0 : i32
      %59 = tpu.memref_slice %arg3[%58, %c0_i32_27] : memref<32x128xf32, #tpu.memory_space<any>> -> memref<1x128xf32, #tpu.memory_space<any>>
      %60 = tpu.memref_squeeze %59 : memref<1x128xf32, #tpu.memory_space<any>> -> memref<128xf32, #tpu.memory_space<any>>
      %c0_i32_28 = arith.constant 0 : i32
      %61 = tpu.memref_slice %arg8[%54, %c0_i32_26, %c0_i32_28] : memref<2x8x128xf32, #tpu.memory_space<vmem>> -> memref<1x1x128xf32, #tpu.memory_space<vmem>>
      %62 = tpu.memref_squeeze %61 : memref<1x1x128xf32, #tpu.memory_space<vmem>> -> memref<128xf32, #tpu.memory_space<vmem>>
      %63 = tpu.memref_slice %arg9[%54] : memref<2x!tpu.dma_semaphore, #tpu.memory_space<semaphore_mem>> -> memref<1x!tpu.dma_semaphore, #tpu.memory_space<semaphore_mem>>
      %64 = tpu.memref_squeeze %63 : memref<1x!tpu.dma_semaphore, #tpu.memory_space<semaphore_mem>> -> memref<!tpu.dma_semaphore, #tpu.memory_space<semaphore_mem>>
      tpu.enqueue_dma source(%60 : memref<128xf32, #tpu.memory_space<any>>) target(%62 : memref<128xf32, #tpu.memory_space<vmem>>) target_semaphore(%64 : memref<!tpu.dma_semaphore, #tpu.memory_space<semaphore_mem>>)
      %c1_i32_29 = arith.constant 1 : i32
      %65 = arith.addi %55, %c1_i32_29 : i32
      %66 = arith.index_cast %65 : i32 to index
      %67 = memref.load %arg2[%66] : memref<16xi32, #tpu.memory_space<smem>>
      %c0_i32_30 = arith.constant 0 : i32
      %68 = tpu.memref_slice %arg3[%67, %c0_i32_30] : memref<32x128xf32, #tpu.memory_space<any>> -> memref<1x128xf32, #tpu.memory_space<any>>
      %69 = tpu.memref_squeeze %68 : memref<1x128xf32, #tpu.memory_space<any>> -> memref<128xf32, #tpu.memory_space<any>>
      %c0_i32_31 = arith.constant 0 : i32
      %70 = tpu.memref_slice %arg8[%54, %c1_i32_29, %c0_i32_31] : memref<2x8x128xf32, #tpu.memory_space<vmem>> -> memref<1x1x128xf32, #tpu.memory_space<vmem>>
      %71 = tpu.memref_squeeze %70 : memref<1x1x128xf32, #tpu.memory_space<vmem>> -> memref<128xf32, #tpu.memory_space<vmem>>
      %72 = tpu.memref_slice %arg9[%54] : memref<2x!tpu.dma_semaphore, #tpu.memory_space<semaphore_mem>> -> memref<1x!tpu.dma_semaphore, #tpu.memory_space<semaphore_mem>>
      %73 = tpu.memref_squeeze %72 : memref<1x!tpu.dma_semaphore, #tpu.memory_space<semaphore_mem>> -> memref<!tpu.dma_semaphore, #tpu.memory_space<semaphore_mem>>
      tpu.enqueue_dma source(%69 : memref<128xf32, #tpu.memory_space<any>>) target(%71 : memref<128xf32, #tpu.memory_space<vmem>>) target_semaphore(%73 : memref<!tpu.dma_semaphore, #tpu.memory_space<semaphore_mem>>)
      %c2_i32_32 = arith.constant 2 : i32
      %74 = arith.addi %55, %c2_i32_32 : i32
      %75 = arith.index_cast %74 : i32 to index
      %76 = memref.load %arg2[%75] : memref<16xi32, #tpu.memory_space<smem>>
      %c0_i32_33 = arith.constant 0 : i32
      %77 = tpu.memref_slice %arg3[%76, %c0_i32_33] : memref<32x128xf32, #tpu.memory_space<any>> -> memref<1x128xf32, #tpu.memory_space<any>>
      %78 = tpu.memref_squeeze %77 : memref<1x128xf32, #tpu.memory_space<any>> -> memref<128xf32, #tpu.memory_space<any>>
      %c0_i32_34 = arith.constant 0 : i32
      %79 = tpu.memref_slice %arg8[%54, %c2_i32_32, %c0_i32_34] : memref<2x8x128xf32, #tpu.memory_space<vmem>> -> memref<1x1x128xf32, #tpu.memory_space<vmem>>
      %80 = tpu.memref_squeeze %79 : memref<1x1x128xf32, #tpu.memory_space<vmem>> -> memref<128xf32, #tpu.memory_space<vmem>>
      %81 = tpu.memref_slice %arg9[%54] : memref<2x!tpu.dma_semaphore, #tpu.memory_space<semaphore_mem>> -> memref<1x!tpu.dma_semaphore, #tpu.memory_space<semaphore_mem>>
      %82 = tpu.memref_squeeze %81 : memref<1x!tpu.dma_semaphore, #tpu.memory_space<semaphore_mem>> -> memref<!tpu.dma_semaphore, #tpu.memory_space<semaphore_mem>>
      tpu.enqueue_dma source(%78 : memref<128xf32, #tpu.memory_space<any>>) target(%80 : memref<128xf32, #tpu.memory_space<vmem>>) target_semaphore(%82 : memref<!tpu.dma_semaphore, #tpu.memory_space<semaphore_mem>>)
      %c3_i32 = arith.constant 3 : i32
      %83 = arith.addi %55, %c3_i32 : i32
      %84 = arith.index_cast %83 : i32 to index
      %85 = memref.load %arg2[%84] : memref<16xi32, #tpu.memory_space<smem>>
      %c0_i32_35 = arith.constant 0 : i32
      %86 = tpu.memref_slice %arg3[%85, %c0_i32_35] : memref<32x128xf32, #tpu.memory_space<any>> -> memref<1x128xf32, #tpu.memory_space<any>>
      %87 = tpu.memref_squeeze %86 : memref<1x128xf32, #tpu.memory_space<any>> -> memref<128xf32, #tpu.memory_space<any>>
      %c0_i32_36 = arith.constant 0 : i32
      %88 = tpu.memref_slice %arg8[%54, %c3_i32, %c0_i32_36] : memref<2x8x128xf32, #tpu.memory_space<vmem>> -> memref<1x1x128xf32, #tpu.memory_space<vmem>>
      %89 = tpu.memref_squeeze %88 : memref<1x1x128xf32, #tpu.memory_space<vmem>> -> memref<128xf32, #tpu.memory_space<vmem>>
      %90 = tpu.memref_slice %arg9[%54] : memref<2x!tpu.dma_semaphore, #tpu.memory_space<semaphore_mem>> -> memref<1x!tpu.dma_semaphore, #tpu.memory_space<semaphore_mem>>
      %91 = tpu.memref_squeeze %90 : memref<1x!tpu.dma_semaphore, #tpu.memory_space<semaphore_mem>> -> memref<!tpu.dma_semaphore, #tpu.memory_space<semaphore_mem>>
      tpu.enqueue_dma source(%87 : memref<128xf32, #tpu.memory_space<any>>) target(%89 : memref<128xf32, #tpu.memory_space<vmem>>) target_semaphore(%91 : memref<!tpu.dma_semaphore, #tpu.memory_space<semaphore_mem>>)
      %c4_i32 = arith.constant 4 : i32
      %92 = arith.addi %55, %c4_i32 : i32
      %93 = arith.index_cast %92 : i32 to index
      %94 = memref.load %arg2[%93] : memref<16xi32, #tpu.memory_space<smem>>
      %c0_i32_37 = arith.constant 0 : i32
      %95 = tpu.memref_slice %arg3[%94, %c0_i32_37] : memref<32x128xf32, #tpu.memory_space<any>> -> memref<1x128xf32, #tpu.memory_space<any>>
      %96 = tpu.memref_squeeze %95 : memref<1x128xf32, #tpu.memory_space<any>> -> memref<128xf32, #tpu.memory_space<any>>
      %c0_i32_38 = arith.constant 0 : i32
      %97 = tpu.memref_slice %arg8[%54, %c4_i32, %c0_i32_38] : memref<2x8x128xf32, #tpu.memory_space<vmem>> -> memref<1x1x128xf32, #tpu.memory_space<vmem>>
      %98 = tpu.memref_squeeze %97 : memref<1x1x128xf32, #tpu.memory_space<vmem>> -> memref<128xf32, #tpu.memory_space<vmem>>
      %99 = tpu.memref_slice %arg9[%54] : memref<2x!tpu.dma_semaphore, #tpu.memory_space<semaphore_mem>> -> memref<1x!tpu.dma_semaphore, #tpu.memory_space<semaphore_mem>>
      %100 = tpu.memref_squeeze %99 : memref<1x!tpu.dma_semaphore, #tpu.memory_space<semaphore_mem>> -> memref<!tpu.dma_semaphore, #tpu.memory_space<semaphore_mem>>
      tpu.enqueue_dma source(%96 : memref<128xf32, #tpu.memory_space<any>>) target(%98 : memref<128xf32, #tpu.memory_space<vmem>>) target_semaphore(%100 : memref<!tpu.dma_semaphore, #tpu.memory_space<semaphore_mem>>)
      %c5_i32 = arith.constant 5 : i32
      %101 = arith.addi %55, %c5_i32 : i32
      %102 = arith.index_cast %101 : i32 to index
      %103 = memref.load %arg2[%102] : memref<16xi32, #tpu.memory_space<smem>>
      %c0_i32_39 = arith.constant 0 : i32
      %104 = tpu.memref_slice %arg3[%103, %c0_i32_39] : memref<32x128xf32, #tpu.memory_space<any>> -> memref<1x128xf32, #tpu.memory_space<any>>
      %105 = tpu.memref_squeeze %104 : memref<1x128xf32, #tpu.memory_space<any>> -> memref<128xf32, #tpu.memory_space<any>>
      %c0_i32_40 = arith.constant 0 : i32
      %106 = tpu.memref_slice %arg8[%54, %c5_i32, %c0_i32_40] : memref<2x8x128xf32, #tpu.memory_space<vmem>> -> memref<1x1x128xf32, #tpu.memory_space<vmem>>
      %107 = tpu.memref_squeeze %106 : memref<1x1x128xf32, #tpu.memory_space<vmem>> -> memref<128xf32, #tpu.memory_space<vmem>>
      %108 = tpu.memref_slice %arg9[%54] : memref<2x!tpu.dma_semaphore, #tpu.memory_space<semaphore_mem>> -> memref<1x!tpu.dma_semaphore, #tpu.memory_space<semaphore_mem>>
      %109 = tpu.memref_squeeze %108 : memref<1x!tpu.dma_semaphore, #tpu.memory_space<semaphore_mem>> -> memref<!tpu.dma_semaphore, #tpu.memory_space<semaphore_mem>>
      tpu.enqueue_dma source(%105 : memref<128xf32, #tpu.memory_space<any>>) target(%107 : memref<128xf32, #tpu.memory_space<vmem>>) target_semaphore(%109 : memref<!tpu.dma_semaphore, #tpu.memory_space<semaphore_mem>>)
      %c6_i32 = arith.constant 6 : i32
      %110 = arith.addi %55, %c6_i32 : i32
      %111 = arith.index_cast %110 : i32 to index
      %112 = memref.load %arg2[%111] : memref<16xi32, #tpu.memory_space<smem>>
      %c0_i32_41 = arith.constant 0 : i32
      %113 = tpu.memref_slice %arg3[%112, %c0_i32_41] : memref<32x128xf32, #tpu.memory_space<any>> -> memref<1x128xf32, #tpu.memory_space<any>>
      %114 = tpu.memref_squeeze %113 : memref<1x128xf32, #tpu.memory_space<any>> -> memref<128xf32, #tpu.memory_space<any>>
      %c0_i32_42 = arith.constant 0 : i32
      %115 = tpu.memref_slice %arg8[%54, %c6_i32, %c0_i32_42] : memref<2x8x128xf32, #tpu.memory_space<vmem>> -> memref<1x1x128xf32, #tpu.memory_space<vmem>>
      %116 = tpu.memref_squeeze %115 : memref<1x1x128xf32, #tpu.memory_space<vmem>> -> memref<128xf32, #tpu.memory_space<vmem>>
      %117 = tpu.memref_slice %arg9[%54] : memref<2x!tpu.dma_semaphore, #tpu.memory_space<semaphore_mem>> -> memref<1x!tpu.dma_semaphore, #tpu.memory_space<semaphore_mem>>
      %118 = tpu.memref_squeeze %117 : memref<1x!tpu.dma_semaphore, #tpu.memory_space<semaphore_mem>> -> memref<!tpu.dma_semaphore, #tpu.memory_space<semaphore_mem>>
      tpu.enqueue_dma source(%114 : memref<128xf32, #tpu.memory_space<any>>) target(%116 : memref<128xf32, #tpu.memory_space<vmem>>) target_semaphore(%118 : memref<!tpu.dma_semaphore, #tpu.memory_space<semaphore_mem>>)
      %c7_i32 = arith.constant 7 : i32
      %119 = arith.addi %55, %c7_i32 : i32
      %120 = arith.index_cast %119 : i32 to index
      %121 = memref.load %arg2[%120] : memref<16xi32, #tpu.memory_space<smem>>
      %c0_i32_43 = arith.constant 0 : i32
      %122 = tpu.memref_slice %arg3[%121, %c0_i32_43] : memref<32x128xf32, #tpu.memory_space<any>> -> memref<1x128xf32, #tpu.memory_space<any>>
      %123 = tpu.memref_squeeze %122 : memref<1x128xf32, #tpu.memory_space<any>> -> memref<128xf32, #tpu.memory_space<any>>
      %c0_i32_44 = arith.constant 0 : i32
      %124 = tpu.memref_slice %arg8[%54, %c7_i32, %c0_i32_44] : memref<2x8x128xf32, #tpu.memory_space<vmem>> -> memref<1x1x128xf32, #tpu.memory_space<vmem>>
      %125 = tpu.memref_squeeze %124 : memref<1x1x128xf32, #tpu.memory_space<vmem>> -> memref<128xf32, #tpu.memory_space<vmem>>
      %126 = tpu.memref_slice %arg9[%54] : memref<2x!tpu.dma_semaphore, #tpu.memory_space<semaphore_mem>> -> memref<1x!tpu.dma_semaphore, #tpu.memory_space<semaphore_mem>>
      %127 = tpu.memref_squeeze %126 : memref<1x!tpu.dma_semaphore, #tpu.memory_space<semaphore_mem>> -> memref<!tpu.dma_semaphore, #tpu.memory_space<semaphore_mem>>
      tpu.enqueue_dma source(%123 : memref<128xf32, #tpu.memory_space<any>>) target(%125 : memref<128xf32, #tpu.memory_space<vmem>>) target_semaphore(%127 : memref<!tpu.dma_semaphore, #tpu.memory_space<semaphore_mem>>)
      %c8_i32_45 = arith.constant 8 : i32
    } else {
    }
    %c0_i32_3 = arith.constant 0 : i32
    %c0_i32_4 = arith.constant 0 : i32
    %8 = tpu.memref_slice %arg3[%c0_i32_3, %c0_i32_4] : memref<32x128xf32, #tpu.memory_space<any>> -> memref<8x128xf32, #tpu.memory_space<any>>
    %c0_i32_5 = arith.constant 0 : i32
    %c0_i32_6 = arith.constant 0 : i32
    %9 = tpu.memref_slice %arg8[%0, %c0_i32_5, %c0_i32_6] : memref<2x8x128xf32, #tpu.memory_space<vmem>> -> memref<1x8x128xf32, #tpu.memory_space<vmem>>
    %10 = tpu.memref_squeeze %9 : memref<1x8x128xf32, #tpu.memory_space<vmem>> -> memref<8x128xf32, #tpu.memory_space<vmem>>
    %11 = tpu.memref_slice %arg9[%0] : memref<2x!tpu.dma_semaphore, #tpu.memory_space<semaphore_mem>> -> memref<1x!tpu.dma_semaphore, #tpu.memory_space<semaphore_mem>>
    %12 = tpu.memref_squeeze %11 : memref<1x!tpu.dma_semaphore, #tpu.memory_space<semaphore_mem>> -> memref<!tpu.dma_semaphore, #tpu.memory_space<semaphore_mem>>
    tpu.wait_dma2 semaphore(%12 : memref<!tpu.dma_semaphore, #tpu.memory_space<semaphore_mem>>) src(%8 : memref<8x128xf32, #tpu.memory_space<any>>) dst(%10 : memref<8x128xf32, #tpu.memory_space<vmem>>)
    %c0 = arith.constant 0 : index
    %c0_7 = arith.constant 0 : index
    %13 = vector.load %arg5[%c0, %c0_7] : memref<8x1xi32, #tpu.memory_space<vmem>>, vector<8x1xi32>
    %c0_8 = arith.constant 0 : index
    %c0_9 = arith.constant 0 : index
    %14 = vector.load %arg4[%c0_8, %c0_9] : memref<3x128xf32, #tpu.memory_space<vmem>>, vector<3x128xf32>
    %15 = vector.extract_strided_slice %14 {offsets = [0, 0], sizes = [1, 128], strides = [1, 1]} : vector<3x128xf32> to vector<1x128xf32>
    %16 = vector.extract_strided_slice %14 {offsets = [1, 0], sizes = [1, 128], strides = [1, 1]} : vector<3x128xf32> to vector<1x128xf32>
    %17 = vector.extract_strided_slice %14 {offsets = [2, 0], sizes = [1, 128], strides = [1, 1]} : vector<3x128xf32> to vector<1x128xf32>
    %c1_i32_10 = arith.constant 1 : i32
    %18 = vector.broadcast %c1_i32_10 : i32 to vector<8x1xi32>
    %19 = arith.cmpi eq, %13, %18 : vector<8x1xi32>
    %c2_i32_11 = arith.constant 2 : i32
    %20 = vector.broadcast %c2_i32_11 : i32 to vector<8x1xi32>
    %21 = arith.cmpi eq, %13, %20 : vector<8x1xi32>
    %22 = vector.shape_cast %21 : vector<8x1xi1> to vector<8x1xi1>
    %23 = vector.broadcast %22 : vector<8x1xi1> to vector<8x128xi1>
    %24 = vector.shape_cast %17 : vector<1x128xf32> to vector<1x128xf32>
    %25 = vector.broadcast %24 : vector<1x128xf32> to vector<8x128xf32>
    %26 = vector.shape_cast %15 : vector<1x128xf32> to vector<1x128xf32>
    %27 = vector.broadcast %26 : vector<1x128xf32> to vector<8x128xf32>
    %28 = arith.select %23, %25, %27 : vector<8x128xi1>, vector<8x128xf32>
    %29 = vector.shape_cast %19 : vector<8x1xi1> to vector<8x1xi1>
    %30 = vector.broadcast %29 : vector<8x1xi1> to vector<8x128xi1>
    %31 = vector.shape_cast %16 : vector<1x128xf32> to vector<1x128xf32>
    %32 = vector.broadcast %31 : vector<1x128xf32> to vector<8x128xf32>
    %33 = arith.select %30, %32, %28 : vector<8x128xi1>, vector<8x128xf32>
    %c1_i32_12 = arith.constant 1 : i32
    %c0_i32_13 = arith.constant 0 : i32
    %34 = arith.cmpi eq, %c1_i32_12, %c0_i32_13 : i32
    %c1_i32_14 = arith.constant 1 : i32
    %35 = arith.select %34, %c1_i32_14, %c1_i32_12 : i32
    %36 = arith.remsi %arg0, %35 : i32
    %c0_i32_15 = arith.constant 0 : i32
    %37 = arith.cmpi ne, %36, %c0_i32_15 : i32
    %c0_i32_16 = arith.constant 0 : i32
    %38 = arith.cmpi slt, %36, %c0_i32_16 : i32
    %c0_i32_17 = arith.constant 0 : i32
    %39 = arith.cmpi slt, %35, %c0_i32_17 : i32
    %40 = arith.xori %38, %39 : i1
    %41 = arith.andi %40, %37 : i1
    %42 = arith.addi %36, %35 : i32
    %43 = arith.select %41, %42, %36 : i32
    %c8_i32 = arith.constant 8 : i32
    %44 = arith.muli %43, %c8_i32 : i32
    %45 = arith.index_cast %44 : i32 to index
    %c0_18 = arith.constant 0 : index
    %46 = vector.load %arg6[%45, %c0_18] : memref<8x128xf32, #tpu.memory_space<vmem>>, vector<8x128xf32>
    %47 = arith.index_cast %0 : i32 to index
    %c0_19 = arith.constant 0 : index
    %c0_20 = arith.constant 0 : index
    %48 = vector.load %arg8[%47, %c0_19, %c0_20] : memref<2x8x128xf32, #tpu.memory_space<vmem>>, vector<1x8x128xf32>
    %49 = vector.shape_cast %48 : vector<1x8x128xf32> to vector<8x128xf32>
    %50 = arith.addf %49, %46 : vector<8x128xf32>
    %51 = arith.addf %50, %33 : vector<8x128xf32>
    %c0_21 = arith.constant 0 : index
    %c0_22 = arith.constant 0 : index
    %52 = vector.load %arg7[%c0_21, %c0_22] : memref<8x128xf32, #tpu.memory_space<vmem>>, vector<8x128xf32>
    tpu.vector_store %arg7[%c0_21, %c0_22], %51 {strides = array<i32>} : memref<8x128xf32, #tpu.memory_space<vmem>>, vector<8x128xf32>,
    return
  }
  func.func @transform_1(%arg0: i32, %arg1: memref<1xi32, #tpu.memory_space<smem>>, %arg2: memref<16xi32, #tpu.memory_space<smem>>) -> (i32, i32) {
    %c0_i32 = arith.constant 0 : i32
    %c0_i32_0 = arith.constant 0 : i32
    %c0_i32_1 = arith.constant 0 : i32
    return %c0_i32, %c0_i32_0 : i32, i32
  }
  func.func @transform_2(%arg0: i32, %arg1: memref<1xi32, #tpu.memory_space<smem>>, %arg2: memref<16xi32, #tpu.memory_space<smem>>) -> (i32, i32) {
    %c0_i32 = arith.constant 0 : i32
    %c0_i32_0 = arith.constant 0 : i32
    return %arg0, %c0_i32 : i32, i32
  }
  func.func @transform_3(%arg0: i32, %arg1: memref<1xi32, #tpu.memory_space<smem>>, %arg2: memref<16xi32, #tpu.memory_space<smem>>) -> (i32, i32) {
    %c0_i32 = arith.constant 0 : i32
    %c0_i32_0 = arith.constant 0 : i32
    %c0_i32_1 = arith.constant 0 : i32
    return %c0_i32, %c0_i32_0 : i32, i32
  }
  func.func @transform_4(%arg0: i32, %arg1: memref<1xi32, #tpu.memory_space<smem>>, %arg2: memref<16xi32, #tpu.memory_space<smem>>) -> (i32, i32) {
    %c0_i32 = arith.constant 0 : i32
    %c0_i32_0 = arith.constant 0 : i32
    return %arg0, %c0_i32 : i32, i32
  }
}

</mosaic_0001>

<bundles_post_ra>
// kernel: tpu_custom_call.1
= control target key start
LH: loop header
LB: loop body
LE: loop exit
PB: predicated region body
PF: predicated region fallthrough
CT: control target
= control target key end

     0   :  { %s1905_s0 = inlined_call_operand.<no memory space> [shape: s32[1], index: 0, kind: input, shape index: {}]   ;;  %s1906_s1 = inlined_call_operand.vmem [shape: s32[16], index: 1, kind: input, shape index: {}]   ;;  %s1907_s2 = inlined_call_operand.hbm [shape: f32[32,128], index: 2, kind: input, shape index: {}]   ;;  %s1908_s3 = inlined_call_operand.vmem [shape: f32[3,128], index: 3, kind: input, shape index: {}]   ;;  %s1909_s4 = inlined_call_operand.vmem [shape: s32[16,1], index: 4, kind: input, shape index: {}]   ;;  %s1910_s5 = inlined_call_operand.vmem [shape: f32[8,128], index: 5, kind: input, shape index: {}]   ;;  %s1911_s6 = inlined_call_operand.hbm [shape: f32[16,128], index: 6, kind: output, shape index: {}]  }
   0x1   :  { %1921 = sst [smem:[#allocation60_spill]] %s1909_s4  ;;  %s12_s22 = sshll.u32 %s1906_s1, 4  ;;  %s13_s22 = int_to_ptr.vmem [resolvable:$true] %s12_s22 }
   0x2   :  { %1922 = sst [smem:[#allocation61_spill]] %s1911_s6  ;;  %s768_s23 = scalar_lea.vmem %s13_s22, 16 }
   0x3   :  { %p769_p0 = scmp.ne.s32.totalorder %s13_s22, %s768_s23  ;;  %p773_p1 = scmp.lt.s32.totalorder %s13_s22, %s13_s22 }
   0x4   :  { %p774_p2 = scmp.lt.s32.totalorder %s768_s23, %s768_s23 }
   0x6   :  { %p775_p3 = por %p774_p2, %p773_p1 }
   0x8   :  { %p776_p4 = pnand %p775_p3, %p769_p0 }
   0xa   :  { %779 = shalt.err (!%p776_p4)  }
   0xb   :  { %s1296_s24 = smov [#allocation6]  }
   0xc   :  { %15 = dma.vmem_to_smem %s13_s22, 16, %s1296_s24, [#allocation4] }
   0xd   :  { %1272 = dma.done.wait [#allocation4], 16 }
   0xe   :  { %1273 = vsyncadd [#allocation4], 4294967280 }
   0xf   :  { %17 = sfence }
  0x10   :  { %18 = vsyncpa [#allocation8], 0 }
  0x11   :  { %20 = vsyncpa [#allocation8 + $0x1], 0  ;;  %s1345_s25 = smov 0   ;;  %s1347_s26 = smov 0  }
  0x12   :  { %s1349_s1 = smov 0   ;;  %s1351_s27 = smov 0  }
  0x13 LB: > { %1923 = sst [smem:[#allocation54_spill]] %s1282_s25  ;;  %s1366_s28 = sadd.s32 4294967295, %s1294_s27   ;;  %s1294_s27 = sphi %s1351_s27, %s1942_s27   ;;  %s1290_s1 = sphi %s1349_s1, %s1944_s1   ;;  %s1286_s26 = sphi %s1347_s26, %s1946_s26   ;;  %s1282_s25 = sphi %s1345_s25, %s1945_s25  }
  0x14   : > { %1924 = sst [smem:[#allocation55_spill]] %s1290_s1  ;;  %s632_s29 = sadd.s32 4294967294, %s1294_s27  }
  0x15   : > { %1925 = sst [smem:[#allocation56_spill]] %s1294_s27  ;;  %s1370_s30 = sadd.s32 1, %s1294_s27  }
  0x16   : > { %1926 = sst [smem:[#allocation57_spill]] %s1370_s30  ;;  %s101_s7 = sadd.s32 1, %s1290_s1 }
  0x17   : > { %s98_s8 = ssub.s32 %s1294_s27, %s1370_s30  ;;  %p111_p5 = scmp.ne.s32.totalorder %s1290_s1, %s1286_s26 }
  0x18   : > { %p99_p6 = scmp.eq.s32.totalorder %s98_s8, 0  ;;  %p112_p7 = scmp.eq.s32.totalorder %s1366_s28, 1 }
  0x19   : > { %p117_p8 = scmp.ne.s32.totalorder %s1286_s26, %s1282_s25  ;;  %p118_p9 = scmp.eq.s32.totalorder %s632_s29, 1 }
  0x1a   : > { %s1381_s9 = scalar_select %p99_p6, %s1290_s1, %s101_s7  }
  0x1b   : > { %p1383_p10 = por %p112_p7, %p111_p5  ;;  %p1387_p11 = por %p118_p9, %p117_p8 }
  0x1c   : > { %1927 = sst [smem:[#allocation58_spill]] %s1381_s9  ;;  %p635_p12 = scmp.ge.s32.totalorder %s1294_s27, 1 }
  0x1d   : > { %s1928_s10 = scalar_select %p1383_p10, 1, 0 }
  0x1e   : > { %s1929_s11 = scalar_select %p1387_p11, 1, 0 }
  0x1f   : > { %p149_p13 = scmp.lt.s32.totalorder %s1294_s27, 3 }
  0x20   : > { %1930 = sst [smem:[#allocation59_spill]] %s1929_s11 }
  0x21   : > { %p150_p0 = pnand %p635_p12, %p149_p13 }
  0x22   : > { %s1912_s12 = sand.u32 (!%p150_p0), 1, %s1286_s26   ;;  %p172_p1 = scmp.lt.s32.totalorder (!%p150_p0), %s1366_s28, 1 }
  0x23   : > { %153 = sbr.rel (%p150_p0) target bundleno = 602 (0x25a), region = 32  ;;  %s1397_s13 = sshll.u32 (!%p150_p0), %s1912_s12, 3 }
  0x24   : > { %p722_p2 = scmp.eq.s32.totalorder (!%p150_p0), %s1366_s28, 0  ;;  %s186_s15 = sld [smem:[#allocation6]] (!%p150_p0) }
  0x25   : > { %s1297_s17 = smov (!%p150_p0), [#allocation2]   ;;  %s1931_s4 = sld [smem:[#allocation60_spill]] (!%p150_p0) }
  0x26   : > { %s196_s18 = sshll.u32 (!%p150_p0), %s1297_s17, 4  ;;  %s1408_s0 = sld [smem:[#allocation6 + $0x1]] (!%p150_p0)  ;;  %s1406_s18 = int_to_ptr.vmem [resolvable:$true] %s196_s18 }
  0x27   : > { %s1298_s22 = smov (!%p150_p0), [#allocation2 + $0x1]   ;;  %s1410_s24 = sld [smem:[#allocation6 + $0x2]] (!%p150_p0) }
  0x28   : > { %s211_s23 = sshll.u32 (!%p150_p0), %s1298_s22, 4  ;;  %s1299_s7 = smov (!%p150_p0), [#allocation2 + $0x2]   ;;  %s1412_s23 = int_to_ptr.vmem [resolvable:$true] %s211_s23 }
  0x29   : > { %s226_s8 = sshll.u32 (!%p150_p0), %s1299_s7, 4  ;;  %s1424_s22 = scalar_lea.hbm (!%p150_p0), %s1907_s2, 512  ;;  %s1417_s8 = int_to_ptr.vmem [resolvable:$true] %s226_s8 }
  0x2a   : > { %s173_s14 = scalar_select %p172_p1, %s1366_s28, 1 }
  0x2b   : > { %s640_s29 = sshll.u32 %s186_s15, 4 }
  0x2c   : > { %s637_s16 = sshll.u32 %s173_s14, 3  ;;  %s188_s12 = scalar_lea.hbm %s1907_s2, %s640_s29 }
  0x2d   : > { %s1404_s21 = scalar_lea.vmem %s1931_s4, %s637_s16  ;;  %s780_s16 = scalar_lea.hbm %s188_s12, 16 }
  0x2e   : > { %p781_p3 = scmp.ne.s32.totalorder %s188_s12, %s780_s16  ;;  %p785_p6 = scmp.lt.u32.totalorder %s188_s12, %s1907_s2 }
  0x2f   : > { %p786_p7 = scmp.lt.u32.totalorder %s1424_s22, %s780_s16  ;;  %p788_p9 = scmp.lt.u32.totalorder %s780_s16, %s188_s12 }
  0x30   : > { %p782_p4 = pnand %p781_p3, %p722_p2 }
  0x31   : > { %p787_p8 = por %p786_p7, %p785_p6 }
  0x32   : > { %p783_p5 = pneg %p782_p4 }
  0x33   : > { %p789_p12 = por %p788_p9, %p787_p8 }
  0x35   : > { %p790_p13 = pnand %p789_p12, %p783_p5 }
  0x37   : > { %793 = shalt.err (!%p790_p13)  }
  0x38   : > { %s794_s29 = scalar_lea.vmem %s1406_s18, 16  ;;  %s1435_s7 = scalar_lea.vmem %s1406_s18, 256 }
  0x39   : > { %p795_p0 = scmp.ne.s32.totalorder %s1406_s18, %s794_s29  ;;  %p801_p4 = scmp.lt.s32.totalorder %s1406_s18, %s1406_s18 }
  0x3a   : > { %p802_p6 = scmp.lt.s32.totalorder %s1435_s7, %s794_s29 }
  0x3b   : > { %p796_p1 = pnand %p795_p0, %p722_p2 }
  0x3c   : > { %p803_p7 = por %p802_p6, %p801_p4 }
  0x3d   : > { %p797_p3 = pneg %p796_p1 }
  0x3f   : > { %p804_p8 = pnand %p803_p7, %p797_p3 }
  0x41   : > { %807 = shalt.err (!%p804_p8)  }
  0x42   : > { %683 = dma.hbm_to_vmem [thread:$0]  (%p722_p2), %s188_s12, 16, %s1406_s18, [#allocation3] }
  0x43   : > { %s642_s4 = sshll.u32 %s1408_s0, 4  ;;  %s1444_s14 = sld [smem:[#allocation6 + $0x3]] }
  0x44   : > { %s202_s19 = scalar_lea.hbm %s1907_s2, %s642_s4  ;;  %s644_s20 = sshll.u32 %s1410_s24, 4 }
  0x45   : > { %s808_s15 = scalar_lea.hbm %s202_s19, 16  ;;  %p813_p13 = scmp.lt.u32.totalorder %s202_s19, %s1907_s2 }
  0x46   : > { %p809_p5 = scmp.ne.s32.totalorder %s202_s19, %s808_s15  ;;  %p814_p0 = scmp.lt.u32.totalorder %s1424_s22, %s808_s15 }
  0x47   : > { %p816_p3 = scmp.lt.u32.totalorder %s808_s15, %s202_s19 }
  0x48   : > { %p810_p9 = pnand %p809_p5, %p722_p2  ;;  %p815_p1 = por %p814_p0, %p813_p13 }
  0x4a   : > { %p811_p12 = pneg %p810_p9  ;;  %p817_p4 = por %p816_p3, %p815_p1 }
  0x4c   : > { %p818_p6 = pnand %p817_p4, %p811_p12 }
  0x4e   : > { %821 = shalt.err (!%p818_p6)  }
  0x4f   : > { %s822_s12 = scalar_lea.vmem %s1412_s23, 16  ;;  %p829_p9 = scmp.lt.s32.totalorder %s1412_s23, %s1406_s18 }
  0x50   : > { %p823_p7 = scmp.ne.s32.totalorder %s1412_s23, %s822_s12  ;;  %p830_p11 = scmp.lt.s32.totalorder %s1435_s7, %s822_s12 }
  0x52   : > { %p824_p8 = pnand %p823_p7, %p722_p2  ;;  %p831_p10 = por %p830_p11, %p829_p9 }
  0x54   : > { %p825_p5 = pneg %p824_p8 }
  0x56   : > { %p832_p0 = pnand %p831_p10, %p825_p5 }
  0x58   : > { %835 = shalt.err (!%p832_p0)  }
  0x59   : > { %684 = dma.hbm_to_vmem [thread:$0]  (%p722_p2), %s202_s19, 16, %s1412_s23, [#allocation3] }
  0x5a   : > { %s217_s24 = scalar_lea.hbm %s1907_s2, %s644_s20 }
  0x5b   : > { %s836_s4 = scalar_lea.hbm %s217_s24, 16  ;;  %p841_p10 = scmp.lt.u32.totalorder %s217_s24, %s1907_s2 }
  0x5c   : > { %p837_p12 = scmp.ne.s32.totalorder %s217_s24, %s836_s4  ;;  %p842_p11 = scmp.lt.u32.totalorder %s1424_s22, %s836_s4 }
  0x5d   : > { %p844_p4 = scmp.lt.u32.totalorder %s836_s4, %s217_s24 }
  0x5e   : > { %p838_p13 = pnand %p837_p12, %p722_p2  ;;  %p843_p3 = por %p842_p11, %p841_p10 }
  0x60   : > { %p839_p1 = pneg %p838_p13  ;;  %p845_p6 = por %p844_p4, %p843_p3 }
  0x62   : > { %p846_p7 = pnand %p845_p6, %p839_p1 }
  0x64   : > { %849 = shalt.err (!%p846_p7)  }
  0x65   : > { %s850_s23 = scalar_lea.vmem %s1417_s8, 16  ;;  %p857_p0 = scmp.lt.s32.totalorder %s1417_s8, %s1406_s18 }
  0x66   : > { %p851_p8 = scmp.ne.s32.totalorder %s1417_s8, %s850_s23  ;;  %p858_p12 = scmp.lt.s32.totalorder %s1435_s7, %s850_s23 }
  0x68   : > { %p852_p5 = pnand %p851_p8, %p722_p2  ;;  %p859_p13 = por %p858_p12, %p857_p0 }
  0x6a   : > { %p853_p9 = pneg %p852_p5 }
  0x6c   : > { %p860_p10 = pnand %p859_p13, %p853_p9 }
  0x6e   : > { %863 = shalt.err (!%p860_p10)  }
  0x6f   : > { %685 = dma.hbm_to_vmem [thread:$0]  (%p722_p2), %s217_s24, 16, %s1417_s8, [#allocation3] }
  0x70   : > { %s1300_s19 = smov [#allocation2 + $0x3]   ;;  %s1485_s15 = sld [smem:[#allocation6 + $0x4]] }
  0x71   : > { %s241_s20 = sshll.u32 %s1300_s19, 4  ;;  %s646_s29 = sshll.u32 %s1444_s14, 4  ;;  %s242_s20 = int_to_ptr.vmem [resolvable:$true] %s241_s20 }
  0x72   : > { %s232_s0 = scalar_lea.hbm %s1907_s2, %s646_s29 }
  0x73   : > { %s864_s4 = scalar_lea.hbm %s232_s0, 16  ;;  %p869_p4 = scmp.lt.u32.totalorder %s232_s0, %s1907_s2 }
  0x74   : > { %p865_p1 = scmp.ne.s32.totalorder %s232_s0, %s864_s4  ;;  %p870_p6 = scmp.lt.u32.totalorder %s1424_s22, %s864_s4 }
  0x75   : > { %p872_p8 = scmp.lt.u32.totalorder %s864_s4, %s232_s0 }
  0x76   : > { %p866_p11 = pnand %p865_p1, %p722_p2  ;;  %p871_p7 = por %p870_p6, %p869_p4 }
  0x78   : > { %p867_p3 = pneg %p866_p11  ;;  %p873_p5 = por %p872_p8, %p871_p7 }
  0x7a   : > { %p874_p9 = pnand %p873_p5, %p867_p3 }
  0x7c   : > { %877 = shalt.err (!%p874_p9)  }
  0x7d   : > { %s878_s8 = scalar_lea.vmem %s242_s20, 16  ;;  %p885_p10 = scmp.lt.s32.totalorder %s242_s20, %s1406_s18 }
  0x7e   : > { %p879_p0 = scmp.ne.s32.totalorder %s242_s20, %s878_s8  ;;  %p886_p1 = scmp.lt.s32.totalorder %s1435_s7, %s878_s8 }
  0x80   : > { %p880_p12 = pnand %p879_p0, %p722_p2  ;;  %p887_p11 = por %p886_p1, %p885_p10 }
  0x82   : > { %p881_p13 = pneg %p880_p12 }
  0x84   : > { %p888_p4 = pnand %p887_p11, %p881_p13 }
  0x86   : > { %891 = shalt.err (!%p888_p4)  }
  0x87   : > { %686 = dma.hbm_to_vmem [thread:$0]  (%p722_p2), %s232_s0, 16, %s242_s20, [#allocation3] }
  0x88   : > { %s1301_s14 = smov [#allocation2 + $0x4]   ;;  %s1503_s23 = sld [smem:[#allocation6 + $0x5]] }
  0x89   : > { %s256_s24 = sshll.u32 %s1301_s14, 4  ;;  %s648_s19 = sshll.u32 %s1485_s15, 4  ;;  %s257_s24 = int_to_ptr.vmem [resolvable:$true] %s256_s24 }
  0x8a   : > { %s1302_s29 = smov [#allocation2 + $0x5]   ;;  %s247_s17 = scalar_lea.hbm %s1907_s2, %s648_s19 }
  0x8b   : > { %s271_s12 = sshll.u32 %s1302_s29, 4  ;;  %s892_s16 = scalar_lea.hbm %s247_s17, 16  ;;  %s1509_s12 = int_to_ptr.vmem [resolvable:$true] %s271_s12 }
  0x8c   : > { %p893_p3 = scmp.ne.s32.totalorder %s247_s17, %s892_s16  ;;  %p897_p8 = scmp.lt.u32.totalorder %s247_s17, %s1907_s2 }
  0x8d   : > { %p898_p5 = scmp.lt.u32.totalorder %s1424_s22, %s892_s16  ;;  %p900_p0 = scmp.lt.u32.totalorder %s892_s16, %s247_s17 }
  0x8e   : > { %p894_p6 = pnand %p893_p3, %p722_p2 }
  0x8f   : > { %p899_p9 = por %p898_p5, %p897_p8 }
  0x90   : > { %p895_p7 = pneg %p894_p6 }
  0x91   : > { %p901_p12 = por %p900_p0, %p899_p9 }
  0x93   : > { %p902_p13 = pnand %p901_p12, %p895_p7 }
  0x95   : > { %905 = shalt.err (!%p902_p13)  }
  0x96   : > { %s906_s15 = scalar_lea.vmem %s257_s24, 16  ;;  %p913_p4 = scmp.lt.s32.totalorder %s257_s24, %s1406_s18 }
  0x97   : > { %p907_p10 = scmp.ne.s32.totalorder %s257_s24, %s906_s15  ;;  %p914_p3 = scmp.lt.s32.totalorder %s1435_s7, %s906_s15 }
  0x99   : > { %p908_p1 = pnand %p907_p10, %p722_p2  ;;  %p915_p6 = por %p914_p3, %p913_p4 }
  0x9b   : > { %p909_p11 = pneg %p908_p1 }
  0x9d   : > { %p916_p5 = pnand %p915_p6, %p909_p11 }
  0x9f   : > { %919 = shalt.err (!%p916_p5)  }
  0xa0   : > { %687 = dma.hbm_to_vmem [thread:$0]  (%p722_p2), %s247_s17, 16, %s257_s24, [#allocation3] }
  0xa1   : > { %s1523_s8 = sld [smem:[#allocation6 + $0x6]]  ;;  %s650_s14 = sshll.u32 %s1503_s23, 4 }
  0xa2   : > { %s1303_s19 = smov [#allocation2 + $0x6]   ;;  %s262_s16 = scalar_lea.hbm %s1907_s2, %s650_s14 }
  0xa3   : > { %s286_s29 = sshll.u32 %s1303_s19, 4  ;;  %s920_s20 = scalar_lea.hbm %s262_s16, 16  ;;  %s1529_s29 = int_to_ptr.vmem [resolvable:$true] %s286_s29 }
  0xa4   : > { %p921_p7 = scmp.ne.s32.totalorder %s262_s16, %s920_s20  ;;  %p925_p0 = scmp.lt.u32.totalorder %s262_s16, %s1907_s2 }
  0xa5   : > { %p926_p12 = scmp.lt.u32.totalorder %s1424_s22, %s920_s20  ;;  %p928_p10 = scmp.lt.u32.totalorder %s920_s20, %s262_s16 }
  0xa6   : > { %p922_p8 = pnand %p921_p7, %p722_p2 }
  0xa7   : > { %p927_p13 = por %p926_p12, %p925_p0 }
  0xa8   : > { %p923_p9 = pneg %p922_p8 }
  0xa9   : > { %p929_p1 = por %p928_p10, %p927_p13 }
  0xab   : > { %p930_p11 = pnand %p929_p1, %p923_p9 }
  0xad   : > { %933 = shalt.err (!%p930_p11)  }
  0xae   : > { %s934_s24 = scalar_lea.vmem %s1509_s12, 16  ;;  %p941_p5 = scmp.lt.s32.totalorder %s1509_s12, %s1406_s18 }
  0xaf   : > { %p935_p4 = scmp.ne.s32.totalorder %s1509_s12, %s934_s24  ;;  %p942_p7 = scmp.lt.s32.totalorder %s1435_s7, %s934_s24 }
  0xb1   : > { %p936_p3 = pnand %p935_p4, %p722_p2  ;;  %p943_p8 = por %p942_p7, %p941_p5 }
  0xb3   : > { %p937_p6 = pneg %p936_p3 }
  0xb5   : > { %p944_p0 = pnand %p943_p8, %p937_p6 }
  0xb7   : > { %947 = shalt.err (!%p944_p0)  }
  0xb8   : > { %688 = dma.hbm_to_vmem [thread:$0]  (%p722_p2), %s262_s16, 16, %s1509_s12, [#allocation3] }
  0xb9   : > { %s1547_s23 = sld [smem:[#allocation6 + $0x7]]  ;;  %s1304_s17 = smov [#allocation2 + $0x7]  }
  0xba   : > { %s301_s14 = sshll.u32 %s1304_s17, 4  ;;  %s652_s19 = sshll.u32 %s1523_s8, 4  ;;  %s1551_s14 = int_to_ptr.vmem [resolvable:$true] %s301_s14 }
  0xbb   : > { %s277_s20 = scalar_lea.hbm %s1907_s2, %s652_s19  ;;  %s177_s0 = ssub.s32 0, %s1366_s28 }
  0xbc   : > { %s948_s15 = scalar_lea.hbm %s277_s20, 16  ;;  %p953_p1 = scmp.lt.u32.totalorder %s277_s20, %s1907_s2 }
  0xbd   : > { %p949_p12 = scmp.ne.s32.totalorder %s277_s20, %s948_s15  ;;  %p954_p11 = scmp.lt.u32.totalorder %s1424_s22, %s948_s15 }
  0xbe   : > { %p956_p3 = scmp.lt.u32.totalorder %s948_s15, %s277_s20 }
  0xbf   : > { %p950_p13 = pnand %p949_p12, %p722_p2  ;;  %p955_p4 = por %p954_p11, %p953_p1 }
  0xc1   : > { %p951_p10 = pneg %p950_p13  ;;  %p957_p6 = por %p956_p3, %p955_p4 }
  0xc3   : > { %p958_p5 = pnand %p957_p6, %p951_p10 }
  0xc5   : > { %961 = shalt.err (!%p958_p5)  }
  0xc6   : > { %s962_s8 = scalar_lea.vmem %s1529_s29, 16  ;;  %p969_p12 = scmp.lt.s32.totalorder %s1529_s29, %s1406_s18 }
  0xc7   : > { %p963_p7 = scmp.ne.s32.totalorder %s1529_s29, %s962_s8  ;;  %p970_p13 = scmp.lt.s32.totalorder %s1435_s7, %s962_s8 }
  0xc9   : > { %p964_p8 = pnand %p963_p7, %p722_p2  ;;  %p971_p9 = por %p970_p13, %p969_p12 }
  0xcb   : > { %p965_p0 = pneg %p964_p8 }
  0xcd   : > { %p972_p1 = pnand %p971_p9, %p965_p0 }
  0xcf   : > { %975 = shalt.err (!%p972_p1)  }
  0xd0   : > { %689 = dma.hbm_to_vmem [thread:$0]  (%p722_p2), %s277_s20, 16, %s1529_s29, [#allocation3] }
  0xd1   : > { %s638_s16 = smin.u32 %s1366_s28, %s177_s0  ;;  %s305_s17 = sadd.s32 1, %s1366_s28 }
  0xd2   : > { %s654_s19 = sshll.u32 %s1547_s23, 4  ;;  %s179_s9 = sand.u32 1, %s638_s16  }
  0xd3   : > { %s292_s24 = scalar_lea.hbm %s1907_s2, %s654_s19  ;;  %s180_s12 = ssub.s32 0, %s179_s9 }
  0xd4   : > { %s976_s8 = scalar_lea.hbm %s292_s24, 16  ;;  %p981_p4 = scmp.lt.u32.totalorder %s292_s24, %s1907_s2 }
  0xd5   : > { %p977_p9 = scmp.ne.s32.totalorder %s292_s24, %s976_s8  ;;  %p982_p3 = scmp.lt.u32.totalorder %s1424_s22, %s976_s8 }
  0xd6   : > { %p984_p5 = scmp.lt.u32.totalorder %s976_s8, %s292_s24 }
  0xd7   : > { %p978_p10 = pnand %p977_p9, %p722_p2  ;;  %p983_p6 = por %p982_p3, %p981_p4 }
  0xd9   : > { %p979_p11 = pneg %p978_p10  ;;  %p985_p7 = por %p984_p5, %p983_p6 }
  0xdb   : > { %p986_p8 = pnand %p985_p7, %p979_p11 }
  0xdd   : > { %989 = shalt.err (!%p986_p8)  }
  0xde   : > { %s990_s29 = scalar_lea.vmem %s1551_s14, 16  ;;  %p997_p1 = scmp.lt.s32.totalorder %s1551_s14, %s1406_s18 }
  0xdf   : > { %p991_p0 = scmp.ne.s32.totalorder %s1551_s14, %s990_s29  ;;  %p998_p9 = scmp.lt.s32.totalorder %s1435_s7, %s990_s29 }
  0xe1   : > { %p992_p12 = pnand %p991_p0, %p722_p2  ;;  %p999_p10 = por %p998_p9, %p997_p1 }
  0xe3   : > { %p993_p13 = pneg %p992_p12 }
  0xe5   : > { %p1000_p3 = pnand %p999_p10, %p993_p13 }
  0xe7   : > { %1003 = shalt.err (!%p1000_p3)  }
  0xe8   : > { %690 = dma.hbm_to_vmem [thread:$0]  (%p722_p2), %s292_s24, 16, %s1551_s14, [#allocation3] }
  0xe9   : > { %p1932_p11 = scmp.lt.s32.totalorder %s1366_s28, 0  ;;  %p1599_p4 = scmp.lt.s32.totalorder %s305_s17, 2 }
  0xea   : > { %s680_s23 = sshll.u32 %s1366_s28, 3 }
  0xeb   : > { %s1948_s12 = smov (!%p1932_p11, %s180_s12), %s179_s9  ;;  %s1605_s20 = sadd.s32 8, %s680_s23 }
  0xec   : > { %s310_s30 = ssub.s32 1, %s1948_s12  ;;  %s329_s15 = sadd.s32 1, %s1605_s20 }
  0xed   : > { %s658_s14 = sshll.u32 %s310_s30, 3  ;;  %s1950_s15 = smov (!%p1599_p4, %s329_s15), 0 }
  0xee   : > { %s692_s0 = scalar_select %p1599_p4, [#allocation6], [#allocation43] }
  0xef   : > { %s693_s16 = scalar_select %p1599_p4, %s1605_s20, 0 }
  0xf0   : > { %s1612_s17 = scalar_lea.vmem [#allocation2], %s658_s14  ;;  %s1629_s25 = scalar_lea.sflag [#allocation3], %s310_s30 }
  0xf1   : > { %s312_s19 = sld [smem:[%s692_s0 + %s693_s16]]  ;;  %s325_s9 = sshll.u32 %s1612_s17, 4  ;;  %s1615_s9 = int_to_ptr.vmem [resolvable:$true] %s325_s9 }
  0xf2   : > { %s569_s24 = scalar_lea.vmem %s1612_s17, 1 [#allocation2] }
  0xf3   : > { %s695_s8 = scalar_select %p1599_p4, [#allocation6], [#allocation44] }
  0xf4   : > { %s342_s23 = sshll.u32 %s569_s24, 4  ;;  %s1648_s23 = int_to_ptr.vmem [resolvable:$true] %s342_s23 }
  0xf5   : > { %s1627_s16 = sld [smem:[%s695_s8 + %s1950_s15]] }
  0xf7   : > { %s657_s29 = sshll.u32 %s312_s19, 4 }
  0xf8   : > { %s314_s14 = scalar_lea.hbm %s1907_s2, %s657_s29 }
  0xf9   : > { %s1004_s27 = scalar_lea.hbm %s314_s14, 16  ;;  %p1009_p7 = scmp.lt.u32.totalorder %s314_s14, %s1907_s2 }
  0xfa   : > { %p1005_p2 = scmp.ne.s32.totalorder %s314_s14, %s1004_s27  ;;  %p1010_p8 = scmp.lt.u32.totalorder %s1424_s22, %s1004_s27 }
  0xfb   : > { %p1012_p12 = scmp.lt.u32.totalorder %s1004_s27, %s314_s14 }
  0xfc   : > { %p1006_p6 = pnand %p1005_p2, %p1599_p4  ;;  %p1011_p0 = por %p1010_p8, %p1009_p7 }
  0xfe   : > { %p1007_p5 = pneg %p1006_p6  ;;  %p1013_p13 = por %p1012_p12, %p1011_p0 }
 0x100   : > { %p1014_p1 = pnand %p1013_p13, %p1007_p5 }
 0x102   : > { %1017 = shalt.err (!%p1014_p1)  }
 0x103   : > { %s1018_s11 = scalar_lea.vmem %s1615_s9, 16  ;;  %p1025_p11 = scmp.lt.s32.totalorder %s1615_s9, %s1406_s18 }
 0x104   : > { %p1019_p9 = scmp.ne.s32.totalorder %s1615_s9, %s1018_s11  ;;  %p1026_p2 = scmp.lt.s32.totalorder %s1435_s7, %s1018_s11 }
 0x106   : > { %p1020_p10 = pnand %p1019_p9, %p1599_p4  ;;  %p1027_p6 = por %p1026_p2, %p1025_p11 }
 0x108   : > { %p1021_p3 = pneg %p1020_p10 }
 0x10a   : > { %p1028_p7 = pnand %p1027_p6, %p1021_p3 }
 0x10c   : > { %1031 = shalt.err (!%p1028_p7)  }
 0x10d   : > { %694 = dma.hbm_to_vmem [thread:$0]  (%p1599_p4), %s314_s14, 16, %s1615_s9, %s1629_s25 }
 0x10e   : > { %s346_s6 = sadd.s32 2, %s1605_s20  ;;  %s574_s30 = scalar_lea.vmem %s1612_s17, 2 [#allocation2] }
 0x10f   : > { %s698_s27 = scalar_select %p1599_p4, [#allocation6], [#allocation45] }
 0x110   : > { %s1952_s6 = smov (!%p1599_p4, %s346_s6), 0  ;;  %s363_s19 = sadd.s32 3, %s1605_s20 }
 0x111   : > { %s659_s4 = sshll.u32 %s1627_s16, 4  ;;  %s1658_s15 = sld [smem:[%s698_s27 + %s1952_s6]] }
 0x112   : > { %s332_s29 = scalar_lea.hbm %s1907_s2, %s659_s4  ;;  %s359_s0 = sshll.u32 %s574_s30, 4  ;;  %s1680_s0 = int_to_ptr.vmem [resolvable:$true] %s359_s0 }
 0x113   : > { %s1032_s11 = scalar_lea.hbm %s332_s29, 16  ;;  %p1037_p12 = scmp.lt.u32.totalorder %s332_s29, %s1907_s2 }
 0x114   : > { %p1033_p5 = scmp.ne.s32.totalorder %s332_s29, %s1032_s11  ;;  %p1038_p13 = scmp.lt.u32.totalorder %s1424_s22, %s1032_s11 }
 0x115   : > { %p1040_p9 = scmp.lt.u32.totalorder %s1032_s11, %s332_s29 }
 0x116   : > { %p1034_p8 = pnand %p1033_p5, %p1599_p4  ;;  %p1039_p1 = por %p1038_p13, %p1037_p12 }
 0x118   : > { %p1035_p0 = pneg %p1034_p8  ;;  %p1041_p10 = por %p1040_p9, %p1039_p1 }
 0x11a   : > { %p1042_p3 = pnand %p1041_p10, %p1035_p0 }
 0x11c   : > { %1045 = shalt.err (!%p1042_p3)  }
 0x11d   : > { %s1046_s16 = scalar_lea.vmem %s1648_s23, 16  ;;  %p1053_p7 = scmp.lt.s32.totalorder %s1648_s23, %s1406_s18 }
 0x11e   : > { %p1047_p11 = scmp.ne.s32.totalorder %s1648_s23, %s1046_s16  ;;  %p1054_p5 = scmp.lt.s32.totalorder %s1435_s7, %s1046_s16 }
 0x120   : > { %p1048_p2 = pnand %p1047_p11, %p1599_p4  ;;  %p1055_p8 = por %p1054_p5, %p1053_p7 }
 0x122   : > { %p1049_p6 = pneg %p1048_p2 }
 0x124   : > { %p1056_p12 = pnand %p1055_p8, %p1049_p6 }
 0x126   : > { %1059 = shalt.err (!%p1056_p12)  }
 0x127   : > { %697 = dma.hbm_to_vmem [thread:$0]  (%p1599_p4), %s332_s29, 16, %s1648_s23, %s1629_s25 }
 0x128   : > { %s579_s6 = scalar_lea.vmem %s1612_s17, 3 [#allocation2]  ;;  %s1954_s19 = smov (!%p1599_p4, %s363_s19), 0 }
 0x129   : > { %s701_s27 = scalar_select %p1599_p4, [#allocation6], [#allocation46] }
 0x12a   : > { %s661_s30 = sshll.u32 %s1658_s15, 4  ;;  %s376_s4 = sshll.u32 %s579_s6, 4  ;;  %s1710_s4 = int_to_ptr.vmem [resolvable:$true] %s376_s4 }
 0x12b   : > { %s349_s11 = scalar_lea.hbm %s1907_s2, %s661_s30  ;;  %s1691_s9 = sld [smem:[%s701_s27 + %s1954_s19]] }
 0x12c   : > { %s1060_s14 = scalar_lea.hbm %s349_s11, 16  ;;  %p1065_p9 = scmp.lt.u32.totalorder %s349_s11, %s1907_s2 }
 0x12d   : > { %p1061_p0 = scmp.ne.s32.totalorder %s349_s11, %s1060_s14  ;;  %p1066_p10 = scmp.lt.u32.totalorder %s1424_s22, %s1060_s14 }
 0x12e   : > { %p1068_p11 = scmp.lt.u32.totalorder %s1060_s14, %s349_s11 }
 0x12f   : > { %p1062_p13 = pnand %p1061_p0, %p1599_p4  ;;  %p1067_p3 = por %p1066_p10, %p1065_p9 }
 0x131   : > { %p1063_p1 = pneg %p1062_p13  ;;  %p1069_p2 = por %p1068_p11, %p1067_p3 }
 0x133   : > { %p1070_p6 = pnand %p1069_p2, %p1063_p1 }
 0x135   : > { %1073 = shalt.err (!%p1070_p6)  }
 0x136   : > { %s1074_s19 = scalar_lea.vmem %s1680_s0, 16  ;;  %p1081_p12 = scmp.lt.s32.totalorder %s1680_s0, %s1406_s18 }
 0x137   : > { %p1075_p7 = scmp.ne.s32.totalorder %s1680_s0, %s1074_s19  ;;  %p1082_p0 = scmp.lt.s32.totalorder %s1435_s7, %s1074_s19 }
 0x139   : > { %p1076_p5 = pnand %p1075_p7, %p1599_p4  ;;  %p1083_p13 = por %p1082_p0, %p1081_p12 }
 0x13b   : > { %p1077_p8 = pneg %p1076_p5 }
 0x13d   : > { %p1084_p9 = pnand %p1083_p13, %p1077_p8 }
 0x13f   : > { %1087 = shalt.err (!%p1084_p9)  }
 0x140   : > { %700 = dma.hbm_to_vmem [thread:$0]  (%p1599_p4), %s349_s11, 16, %s1680_s0, %s1629_s25 }
 0x141   : > { %s380_s15 = sadd.s32 4, %s1605_s20  ;;  %s584_s6 = scalar_lea.vmem %s1612_s17, 4 [#allocation2] }
 0x142   : > { %s704_s16 = scalar_select %p1599_p4, [#allocation6], [#allocation47] }
 0x143   : > { %s1956_s15 = smov (!%p1599_p4, %s380_s15), 0  ;;  %s397_s27 = sadd.s32 5, %s1605_s20 }
 0x144   : > { %s663_s30 = sshll.u32 %s1691_s9, 4  ;;  %s1720_s24 = sld [smem:[%s704_s16 + %s1956_s15]] }
 0x145   : > { %s366_s23 = scalar_lea.hbm %s1907_s2, %s663_s30  ;;  %s393_s29 = sshll.u32 %s584_s6, 4  ;;  %s1742_s29 = int_to_ptr.vmem [resolvable:$true] %s393_s29 }
 0x146   : > { %s1088_s19 = scalar_lea.hbm %s366_s23, 16  ;;  %p1093_p11 = scmp.lt.u32.totalorder %s366_s23, %s1907_s2 }
 0x147   : > { %p1089_p1 = scmp.ne.s32.totalorder %s366_s23, %s1088_s19  ;;  %p1094_p2 = scmp.lt.u32.totalorder %s1424_s22, %s1088_s19 }
 0x148   : > { %p1096_p7 = scmp.lt.u32.totalorder %s1088_s19, %s366_s23 }
 0x149   : > { %p1090_p10 = pnand %p1089_p1, %p1599_p4  ;;  %p1095_p6 = por %p1094_p2, %p1093_p11 }
 0x14b   : > { %p1091_p3 = pneg %p1090_p10  ;;  %p1097_p5 = por %p1096_p7, %p1095_p6 }
 0x14d   : > { %p1098_p8 = pnand %p1097_p5, %p1091_p3 }
 0x14f   : > { %1101 = shalt.err (!%p1098_p8)  }
 0x150   : > { %s1102_s9 = scalar_lea.vmem %s1710_s4, 16  ;;  %p1109_p9 = scmp.lt.s32.totalorder %s1710_s4, %s1406_s18 }
 0x151   : > { %p1103_p12 = scmp.ne.s32.totalorder %s1710_s4, %s1102_s9  ;;  %p1110_p1 = scmp.lt.s32.totalorder %s1435_s7, %s1102_s9 }
 0x153   : > { %p1104_p0 = pnand %p1103_p12, %p1599_p4  ;;  %p1111_p10 = por %p1110_p1, %p1109_p9 }
 0x155   : > { %p1105_p13 = pneg %p1104_p0 }
 0x157   : > { %p1112_p2 = pnand %p1111_p10, %p1105_p13 }
 0x159   : > { %1115 = shalt.err (!%p1112_p2)  }
 0x15a   : > { %703 = dma.hbm_to_vmem [thread:$0]  (%p1599_p4), %s366_s23, 16, %s1710_s4, %s1629_s25 }
 0x15b   : > { %s589_s15 = scalar_lea.vmem %s1612_s17, 5 [#allocation2]  ;;  %s1958_s27 = smov (!%p1599_p4, %s397_s27), 0 }
 0x15c   : > { %s707_s16 = scalar_select %p1599_p4, [#allocation6], [#allocation48] }
 0x15d   : > { %s665_s6 = sshll.u32 %s1720_s24, 4  ;;  %s410_s30 = sshll.u32 %s589_s15, 4  ;;  %s1772_s30 = int_to_ptr.vmem [resolvable:$true] %s410_s30 }
 0x15e   : > { %s383_s19 = scalar_lea.hbm %s1907_s2, %s665_s6  ;;  %s1753_s0 = sld [smem:[%s707_s16 + %s1958_s27]] }
 0x15f   : > { %s1116_s11 = scalar_lea.hbm %s383_s19, 16  ;;  %p1121_p7 = scmp.lt.u32.totalorder %s383_s19, %s1907_s2 }
 0x160   : > { %p1117_p3 = scmp.ne.s32.totalorder %s383_s19, %s1116_s11  ;;  %p1122_p5 = scmp.lt.u32.totalorder %s1424_s22, %s1116_s11 }
 0x161   : > { %p1124_p12 = scmp.lt.u32.totalorder %s1116_s11, %s383_s19 }
 0x162   : > { %p1118_p11 = pnand %p1117_p3, %p1599_p4  ;;  %p1123_p8 = por %p1122_p5, %p1121_p7 }
 0x164   : > { %p1119_p6 = pneg %p1118_p11  ;;  %p1125_p0 = por %p1124_p12, %p1123_p8 }
 0x166   : > { %p1126_p13 = pnand %p1125_p0, %p1119_p6 }
 0x168   : > { %1129 = shalt.err (!%p1126_p13)  }
 0x169   : > { %s1130_s27 = scalar_lea.vmem %s1742_s29, 16  ;;  %p1137_p2 = scmp.lt.s32.totalorder %s1742_s29, %s1406_s18 }
 0x16a   : > { %p1131_p9 = scmp.ne.s32.totalorder %s1742_s29, %s1130_s27  ;;  %p1138_p3 = scmp.lt.s32.totalorder %s1435_s7, %s1130_s27 }
 0x16c   : > { %p1132_p1 = pnand %p1131_p9, %p1599_p4  ;;  %p1139_p11 = por %p1138_p3, %p1137_p2 }
 0x16e   : > { %p1133_p10 = pneg %p1132_p1 }
 0x170   : > { %p1140_p5 = pnand %p1139_p11, %p1133_p10 }
 0x172   : > { %1143 = shalt.err (!%p1140_p5)  }
 0x173   : > { %706 = dma.hbm_to_vmem [thread:$0]  (%p1599_p4), %s383_s19, 16, %s1742_s29, %s1629_s25 }
 0x174   : > { %s414_s24 = sadd.s32 6, %s1605_s20  ;;  %s594_s15 = scalar_lea.vmem %s1612_s17, 6 [#allocation2] }
 0x175   : > { %s710_s9 = scalar_select %p1599_p4, [#allocation6], [#allocation49] }
 0x176   : > { %s1960_s24 = smov (!%p1599_p4, %s414_s24), 0  ;;  %s431_s16 = sadd.s32 7, %s1605_s20 }
 0x177   : > { %s667_s6 = sshll.u32 %s1753_s0, 4  ;;  %s1782_s8 = sld [smem:[%s710_s9 + %s1960_s24]] }
 0x178   : > { %s400_s4 = scalar_lea.hbm %s1907_s2, %s667_s6  ;;  %s427_s23 = sshll.u32 %s594_s15, 4  ;;  %s428_s23 = int_to_ptr.vmem [resolvable:$true] %s427_s23 }
 0x179   : > { %s1144_s27 = scalar_lea.hbm %s400_s4, 16  ;;  %p1149_p12 = scmp.lt.u32.totalorder %s400_s4, %s1907_s2 }
 0x17a   : > { %p1145_p6 = scmp.ne.s32.totalorder %s400_s4, %s1144_s27  ;;  %p1150_p0 = scmp.lt.u32.totalorder %s1424_s22, %s1144_s27 }
 0x17b   : > { %p1152_p9 = scmp.lt.u32.totalorder %s1144_s27, %s400_s4 }
 0x17c   : > { %p1146_p7 = pnand %p1145_p6, %p1599_p4  ;;  %p1151_p13 = por %p1150_p0, %p1149_p12 }
 0x17e   : > { %p1147_p8 = pneg %p1146_p7  ;;  %p1153_p1 = por %p1152_p9, %p1151_p13 }
 0x180   : > { %p1154_p10 = pnand %p1153_p1, %p1147_p8 }
 0x182   : > { %1157 = shalt.err (!%p1154_p10)  }
 0x183   : > { %s1158_s20 = scalar_lea.vmem %s1772_s30, 16  ;;  %p1165_p5 = scmp.lt.s32.totalorder %s1772_s30, %s1406_s18 }
 0x184   : > { %p1159_p2 = scmp.ne.s32.totalorder %s1772_s30, %s1158_s20  ;;  %p1166_p6 = scmp.lt.s32.totalorder %s1435_s7, %s1158_s20 }
 0x186   : > { %p1160_p3 = pnand %p1159_p2, %p1599_p4  ;;  %p1167_p7 = por %p1166_p6, %p1165_p5 }
 0x188   : > { %p1161_p11 = pneg %p1160_p3 }
 0x18a   : > { %p1168_p0 = pnand %p1167_p7, %p1161_p11 }
 0x18c   : > { %1171 = shalt.err (!%p1168_p0)  }
 0x18d   : > { %709 = dma.hbm_to_vmem [thread:$0]  (%p1599_p4), %s400_s4, 16, %s1772_s30, %s1629_s25 }
 0x18e   : > { %s713_s0 = scalar_select %p1599_p4, [#allocation6], [#allocation50] }
 0x18f   : > { %s1962_s16 = smov (!%p1599_p4, %s431_s16), 0  ;;  %s669_s24 = sshll.u32 %s1782_s8, 4 }
 0x190   : > { %s599_s9 = scalar_lea.vmem %s1612_s17, 7 [#allocation2]  ;;  %s417_s14 = scalar_lea.hbm %s1907_s2, %s669_s24 }
 0x191   : > { %s432_s11 = sld [smem:[%s713_s0 + %s1962_s16]]  ;;  %s1172_s27 = scalar_lea.hbm %s417_s14, 16 }
 0x192   : > { %p1173_p8 = scmp.ne.s32.totalorder %s417_s14, %s1172_s27  ;;  %p1177_p9 = scmp.lt.u32.totalorder %s417_s14, %s1907_s2 }
 0x193   : > { %p1178_p1 = scmp.lt.u32.totalorder %s1424_s22, %s1172_s27  ;;  %p1180_p2 = scmp.lt.u32.totalorder %s1172_s27, %s417_s14 }
 0x194   : > { %p1174_p12 = pnand %p1173_p8, %p1599_p4 }
 0x195   : > { %p1179_p10 = por %p1178_p1, %p1177_p9 }
 0x196   : > { %p1175_p13 = pneg %p1174_p12 }
 0x197   : > { %p1181_p3 = por %p1180_p2, %p1179_p10 }
 0x199   : > { %p1182_p11 = pnand %p1181_p3, %p1175_p13 }
 0x19b   : > { %1185 = shalt.err (!%p1182_p11)  }
 0x19c   : > { %s1186_s17 = scalar_lea.vmem %s428_s23, 16  ;;  %p1193_p0 = scmp.lt.s32.totalorder %s428_s23, %s1406_s18 }
 0x19d   : > { %p1187_p5 = scmp.ne.s32.totalorder %s428_s23, %s1186_s17  ;;  %p1194_p8 = scmp.lt.s32.totalorder %s1435_s7, %s1186_s17 }
 0x19f   : > { %p1188_p6 = pnand %p1187_p5, %p1599_p4  ;;  %p1195_p12 = por %p1194_p8, %p1193_p0 }
 0x1a1   : > { %p1189_p7 = pneg %p1188_p6 }
 0x1a3   : > { %p1196_p1 = pnand %p1195_p12, %p1189_p7 }
 0x1a5   : > { %1199 = shalt.err (!%p1196_p1)  }
 0x1a6   : > { %712 = dma.hbm_to_vmem [thread:$0]  (%p1599_p4), %s417_s14, 16, %s428_s23, %s1629_s25 }
 0x1a7   : > { %s444_s30 = sshll.u32 %s599_s9, 4  ;;  %s671_s16 = sshll.u32 %s432_s11, 4  ;;  %s445_s30 = int_to_ptr.vmem [resolvable:$true] %s444_s30 }
 0x1a8   : > { %s434_s20 = scalar_lea.hbm %s1907_s2, %s671_s16 }
 0x1a9   : > { %s1200_s0 = scalar_lea.hbm %s434_s20, 16  ;;  %p1205_p2 = scmp.lt.u32.totalorder %s434_s20, %s1907_s2 }
 0x1aa   : > { %p1201_p13 = scmp.ne.s32.totalorder %s434_s20, %s1200_s0  ;;  %p1206_p3 = scmp.lt.u32.totalorder %s1424_s22, %s1200_s0 }
 0x1ab   : > { %p1208_p5 = scmp.lt.u32.totalorder %s1200_s0, %s434_s20 }
 0x1ac   : > { %p1202_p9 = pnand %p1201_p13, %p1599_p4  ;;  %p1207_p11 = por %p1206_p3, %p1205_p2 }
 0x1ae   : > { %p1203_p10 = pneg %p1202_p9  ;;  %p1209_p6 = por %p1208_p5, %p1207_p11 }
 0x1b0   : > { %p1210_p7 = pnand %p1209_p6, %p1203_p10 }
 0x1b2   : > { %1213 = shalt.err (!%p1210_p7)  }
 0x1b3   : > { %s1214_s23 = scalar_lea.vmem %s445_s30, 16  ;;  %p1221_p1 = scmp.lt.s32.totalorder %s445_s30, %s1406_s18 }
 0x1b4   : > { %p1215_p0 = scmp.ne.s32.totalorder %s445_s30, %s1214_s23  ;;  %p1222_p13 = scmp.lt.s32.totalorder %s1435_s7, %s1214_s23 }
 0x1b6   : > { %p1216_p8 = pnand %p1215_p0, %p1599_p4  ;;  %p1223_p9 = por %p1222_p13, %p1221_p1 }
 0x1b8   : > { %p1217_p12 = pneg %p1216_p8 }
 0x1ba   : > { %p1224_p2 = pnand %p1223_p9, %p1217_p12 }
 0x1bc   : > { %1227 = shalt.err (!%p1224_p2)  }
 0x1bd   : > { %715 = dma.hbm_to_vmem [thread:$0]  (%p1599_p4), %s434_s20, 16, %s445_s30, %s1629_s25 }
 0x1be   : > { %s171_s22 = scalar_lea.vmem [#allocation7], %s1397_s13  ;;  %s1934_s9 = sshll.u32 %s1948_s12, 3 }
 0x1bf   : > { %s449_s6 = scalar_lea.vmem [#allocation2], %s1934_s9  ;;  %s450_s14 = scalar_lea.sflag [#allocation3], %s1948_s12 }
 0x1c0   : > { %1274 = dma.done.wait %s450_s14, 128 }
 0x1c1   : > { %1275 = vsyncadd %s450_s14, 4294967168  ;;  %v1305_v0 = vmov 0   ;;  %v454_v1 = vld [vmem:[%s1404_s21] sm:$0xff]  ;;  %v463_v4 = vlaneseq  ;;  %s675_s12 = sshll.u32 %s1366_s28, 7  ;;  %s501_s1 = sshll.u32 %s171_s22, 4  ;;  %s1861_s1 = int_to_ptr.vmem [resolvable:$true] %s501_s1 }
 0x1c2   : > { %767 = vset.pattern.permute.xlu0 %v1305_v0  ;;  %vm457_vm0 = vcmp.eq.s32.totalorder %v454_v1, 2  ;;  %vm456_vm1 = vcmp.eq.s32.totalorder %v454_v1, 1  ;;  %v455_v8 = vld [vmem:[%s1908_s3] sm:$0x7]  ;;  %s1935_s29 = sld [smem:[#allocation61_spill]]  ;;  %s1936_s17 = sand.u32 1, %s1286_s26  }
 0x1c3   : > { %v458_v2 = vsel %vm457_vm0, 1, %v1305_v0  ;;  %v472_v3 = vsel %vm456_vm1, 1, %v1305_v0  ;;  %v464_v5 = vshrl.u32 %v463_v4, 7  ;;  %v482_v11 = vld [vmem:[%s1910_s5] sm:$0xff]  ;;  %s488_s28 = scalar_lea.sflag [#allocation8], %s1936_s17  ;;  %s1228_s30 = scalar_lea.vmem %s1861_s1, 128 }
 0x1c4   : > { %460 = vperm.xlu0 %767, %v458_v2   ;;  %v483_v12 = vld [vmem:[%s449_s6] sm:$0xff]  ;;  %p1229_p4 = scmp.ne.s32.totalorder %s1861_s1, %s1228_s30  ;;  %p1937_p10 = scmp.ne.s32.totalorder %s1928_s10, 0 }
 0x1c5   : > { %v465_v6 = vsub.s32 2, %v464_v5  ;;  %v469_v7 = vsub.s32 0, %v464_v5  ;;  %v479_v9 = vsub.s32 1, %v464_v5  ;;  %v484_v16 = vadd.f32 %v483_v12, %v482_v11  ;;  %s1306_s16 = smov [#allocation7]  }
 0x1c6   : > { %p1230_p3 = pnand %p1229_p4, %p1937_p10  ;;  %s1232_s8 = sshll.u32 %s1306_s16, 4  ;;  %s1233_s8 = int_to_ptr.vmem [resolvable:$false] %s1232_s8 }
 0x1c7   : > { %v466_v13 = vrot.slane %v455_v8, %v465_v6  ;;  %v470_v14 = vrot.slane %v455_v8, %v469_v7  ;;  %v480_v15 = vrot.slane %v455_v8, %v479_v9  ;;  %s1234_s4 = scalar_lea.vmem %s1233_s8, 256  ;;  %p1235_p5 = scmp.lt.s32.totalorder %s1861_s1, %s1233_s8 }
 0x1c8   : > { %474 = vperm.xlu0 %767, %v472_v3   ;;  %s1859_s19 = scalar_lea.hbm %s1935_s29, %s675_s12  ;;  %p1231_p11 = pneg %p1230_p3 }
 0x1c9   : > { %p1236_p6 = scmp.lt.s32.totalorder %s1234_s4, %s1228_s30 }
 0x1cb   : > { %p1237_p7 = por %p1236_p6, %p1235_p5 }
 0x1cd   : > { %p1238_p0 = pnand %p1237_p7, %p1231_p11 }
 0x243   : > { %v461_v10 = vpop.permute.xlu0 %460 }
 0x244   : > { %vm462_vm2 = vcmp.eq.s32.totalorder %v461_v10, 1 }
 0x245   : > { %v471_v18 = vsel %vm462_vm2, %v466_v13, %v470_v14 }
 0x247   : > { %v475_v17 = vpop.permute.xlu0 %474 }
 0x248   : > { %vm476_vm3 = vcmp.eq.s32.totalorder %v475_v17, 1 }
 0x249   : > { %v481_v19 = vsel %vm476_vm3, %v480_v15, %v471_v18 }
 0x24a   : > { %v485_v20 = vadd.f32 %v484_v16, %v481_v19 }
 0x24c   : > { %486 = vst [vmem:[%s171_s22] sm:$0xff] %v485_v20 }
 0x24d   : > { %1241 = shalt.err (!%p1238_p0)
}
 0x24e   : > { %s1242_s13 = scalar_lea.hbm %s1859_s19, 128  ;;  %s1246_s24 = scalar_lea.hbm %s1935_s29, 256 }
 0x24f   : > { %p1243_p8 = scmp.ne.s32.totalorder %s1859_s19, %s1242_s13  ;;  %p1247_p13 = scmp.lt.u32.totalorder %s1859_s19, %s1935_s29 }
 0x250   : > { %p1248_p9 = scmp.lt.u32.totalorder %s1246_s24, %s1242_s13  ;;  %p1250_p4 = scmp.lt.u32.totalorder %s1242_s13, %s1859_s19 }
 0x251   : > { %p1244_p12 = pnand %p1243_p8, %p1937_p10 }
 0x252   : > { %p1249_p2 = por %p1248_p9, %p1247_p13 }
 0x253   : > { %p1245_p1 = pneg %p1244_p12 }
 0x254   : > { %p1251_p3 = por %p1250_p4, %p1249_p2 }
 0x256   : > { %p1252_p11 = pnand %p1251_p3, %p1245_p1 }
 0x258   : > { %1255 = shalt.err (!%p1252_p11)
}
 0x259   : > { %716 = dma.vmem_to_hbm [thread:$0]  (%p1937_p10), %s1861_s1, 128, %s1859_s19, %s488_s28  }
 0x25a PF: > { %s1938_s22 = sld [smem:[#allocation56_spill]]  ;;  %s1939_s9 = sld [smem:[#allocation54_spill]] }
 0x25b   : > { %s1940_s6 = sld [smem:[#allocation59_spill]] }
 0x260   : > { %p724_p5 = scmp.ge.s32.totalorder %s1938_s22, 2  ;;  %s513_s14 = sand.u32 1, %s1939_s9  }
 0x261   : > { %p1941_p6 = scmp.ne.s32.totalorder %s1940_s6, 0  ;;  %s514_s25 = scalar_lea.sflag [#allocation8], %s513_s14 }
 0x263   : > { %p719_p7 = pnand %p724_p5, %p1941_p6 }
 0x265   : > { %1277 = dma.done.wait (!%p719_p7), %s514_s25, 128  }
 0x266   : > { %1279 = vsyncadd (!%p719_p7), %s514_s25, 4294967168  ;;  %s1942_s27 = sld [smem:[#allocation57_spill]]  ;;  %s1943_s18 = sld [smem:[#allocation55_spill]] }
 0x267   : > { %s1944_s1 = sld [smem:[#allocation58_spill]]  ;;  %s1945_s25 = smov %s1286_s26 }
 0x26c   : > { %p23_p0 = scmp.ge.s32.totalorder %s1942_s27, 4   ;;  %s1946_s26 = smov %s1943_s18 }
 0x26e   :  { %25 = sbr.rel (!%p23_p0) target bundleno = 19 (0x13), region = 174 }
 0x275   :  { %519 = vsyncpa [#allocation8], 1 }
 0x276   :  { %521 = vsyncpa [#allocation8 + $0x1], 1 }
 0x277   :  { %522 = vsyncmov [#allocation3] }
 0x27a   :  { %s523_s10 = vpop.sfrf %522 }
 0x27b   :  { %p678_p10 = scmp.ne.s32.totalorder %s523_s10, 0 }
 0x27d   :  { %527 = shalt.err (%p678_p10)  }
 0x27e   :  { %529 = vsyncmov [#allocation3 + $0x1] }
 0x281   :  { %s530_s7 = vpop.sfrf %529 }
 0x282   :  { %p679_p8 = scmp.ne.s32.totalorder %s530_s7, 0 }
 0x284   :  { %534 = shalt.err (%p679_p8)  }

</bundles_post_ra>
